<compile_context>
chip_gen: v6e
topology: v6e:2x2x1
jax: 0.10.0
libtpu: 0.0.40
codegen_flags: <defaults>
</compile_context>

<pallas_src>
import functools

import jax
import jax.numpy as jnp
from jax.experimental import pallas as pl
from jax.experimental.pallas import tpu as pltpu

TOKEN_NUM = 16
TOKEN_DIM = 128
HEADS = 8
DIM_HEAD = 64
INNER = HEADS * DIM_HEAD          # 512
FEATURE_DIM = 8
HIDDEN = TOKEN_NUM * TOKEN_DIM    # 2048
ATTN_COLS = HEADS * TOKEN_NUM     # 128 (block-diag QK^T output width)


# -----------------------------------------------------------------------------
# Kernel 1: policy stem (fused feature_extractor+KV projection, block-diag QK^T,
#           single softmax, per-head attn@v, single output projection).
# -----------------------------------------------------------------------------
def _stem_attn_kernel(x_ref, wkv_ref, bkv_ref, qblk_ref, wout_ref, bout_ref,
                      o_ref, *, bt, n):
    # x_ref: [bt*n, F], rows indexed by (b, j).
    # kv = (x @ w_fe + b_fe) @ w_kv  ==  x @ (w_fe @ w_kv) + (b_fe @ w_kv)
    kv = jnp.dot(x_ref[...], wkv_ref[...],
                 preferred_element_type=jnp.float32) + bkv_ref[...]       # [bt*n, 1024]
    k = kv[:, :INNER]                                                     # [bt*n, 512]

    # Block-diagonal, pre-scaled Q (built once in init): one K=512 matmul gives
    # every head's q_i . k_j with columns laid out as (h*16 + i).
    sim = jnp.dot(k, qblk_ref[...], preferred_element_type=jnp.float32)   # [bt*n, 128]
    sim3 = sim.reshape(bt, n, ATTN_COLS)                                  # [bt, n, 128]

    # One softmax over the context axis for the whole block.
    m = jnp.max(sim3, axis=1, keepdims=True)                              # [bt, 1, 128]
    p = jnp.exp(sim3 - m)
    denom = jnp.sum(p, axis=1, keepdims=True)
    attn = p * pl.reciprocal(denom, approx=True)                          # [bt, n, 128]
    # TODO(synk): Dropout(p=0.1) on attn is stochastic; eval-mode identity here.

    attn_t = jnp.swapaxes(attn, 1, 2)                                     # [bt, 128, n]
    v3 = kv[:, INNER:].reshape(bt, n, INNER)                              # [bt, n, 512]

    outs = []
    for h in range(HEADS):
        a_h = attn_t[:, h * TOKEN_NUM:(h + 1) * TOKEN_NUM, :]             # [bt, 16, n]
        v_h = v3[:, :, h * DIM_HEAD:(h + 1) * DIM_HEAD]                   # [bt, n, 64]
        outs.append(jnp.einsum('bij,bjd->bid', a_h, v_h,
                               preferred_element_type=jnp.float32))       # [bt, 16, 64]
    out_cat = jnp.concatenate(outs, axis=-1)                              # [bt, 16, 512]
    out2 = out_cat.reshape(bt * TOKEN_NUM, INNER)                         # [bt*16, 512]

    # Single K=512 output-projection matmul for the whole batch tile.
    y = jnp.dot(out2, wout_ref[...],
                preferred_element_type=jnp.float32) + bout_ref[...]       # [bt*16, 128]
    o_ref[...] = y.astype(o_ref.dtype)


def _pick_batch_tile(B, N, target_rows=512):
    """Largest bt dividing B with bt*N a multiple of 8 (unless bt == B) and
    bt*N <= target_rows; falls back to the smallest legal tile otherwise."""
    best, smallest = None, None
    for bt in range(1, B + 1):
        if B % bt:
            continue
        rows = bt * N
        if bt != B and rows % 8:
            continue
        if smallest is None:
            smallest = bt
        if rows <= target_rows:
            best = bt
    return best if best is not None else smallest


def policy_stem(x, params, *, target_rows=512):
    B, N, F = x.shape
    bt = _pick_batch_tile(B, N, target_rows)
    rows = bt * N
    x2 = x.reshape(B * N, F)   # flatten in the wrapper; kernel sees [bt*N, F]
    return pl.pallas_call(
        functools.partial(_stem_attn_kernel, bt=bt, n=N),
        out_shape=jax.ShapeDtypeStruct((B * TOKEN_NUM, TOKEN_DIM), jnp.bfloat16),
        grid_spec=pltpu.PrefetchScalarGridSpec(
            num_scalar_prefetch=0,
            grid=(B // bt,),
            in_specs=[
                pl.BlockSpec((rows, F), lambda i: (i, 0)),                # x tile
                pl.BlockSpec((F, 2 * INNER), lambda i: (0, 0)),           # fused KV weight
                pl.BlockSpec((1, 2 * INNER), lambda i: (0, 0)),           # fused KV bias
                pl.BlockSpec((INNER, ATTN_COLS), lambda i: (0, 0)),       # block-diag Q
                pl.BlockSpec((INNER, TOKEN_DIM), lambda i: (0, 0)),       # w_out
                pl.BlockSpec((1, TOKEN_DIM), lambda i: (0, 0)),           # b_out
            ],
            out_specs=pl.BlockSpec((bt * TOKEN_NUM, TOKEN_DIM), lambda i: (i, 0)),
        ),
        compiler_params=pltpu.CompilerParams(dimension_semantics=("parallel",)),
    )(x2, params["w_kv_f"], params["b_kv_f"], params["q_blk"],
      params["w_out"], params["b_out"])


# -----------------------------------------------------------------------------
# Kernel 2: fused dueling head (streaming, full-K tiles, bf16 weights).
#   Per grid step (n, b):
#     h   = relu(flat_b @ w1[:, n*tn:(n+1)*tn] + b1_tile)   (full K = 2048)
#     out = h @ w2[n*tn:(n+1)*tn, :]                          (block-diag 2nd layer)
#   Partials are summed outside (tiny), then dueling-combined in plain JAX.
# -----------------------------------------------------------------------------
def _fused_head_kernel(x_ref, w1_ref, b1_ref, w2_ref, o_ref):
    # x_ref arrives in bf16 straight from the stem; w1 is bf16, accumulation f32.
    h = jnp.dot(x_ref[...], w1_ref[...],
                preferred_element_type=jnp.float32) + b1_ref[...]          # [Bt, tn]
    h = jnp.maximum(h, 0.0)
    o_ref[0] = jnp.dot(h, w2_ref[...], preferred_element_type=jnp.float32)  # [Bt, A+1]


def _pick_head_batch_tile(B, max_rows=256):
    if B <= max_rows:
        return B
    bt = (max_rows // 8) * 8
    while bt >= 8:
        if B % bt == 0:
            return bt
        bt -= 8
    return B


def dueling_head(flat, params, *, tn=512):
    # tn=512 -> 8 weight tiles (2 MB bf16 each): good pipelining depth even when
    # v7x splits the grid 2-ways across TensorCores, and well under the 32 MiB
    # scoped-VMEM default.  TODO(synk): optional int8/fp8 weight compression for
    # v5e/v6e/v7x if the accuracy budget allows.
    B, K = flat.shape
    w1, b1, w2, b2 = params["w1"], params["b1"], params["w2"], params["b2"]
    N2 = w1.shape[1]                 # 2 * HIDDEN
    out_w = w2.shape[1]              # action_dim + 1
    assert N2 % tn == 0 and w1.shape[0] == K
    n_tiles = N2 // tn
    bt = _pick_head_batch_tile(B)    # guards resident activations at large B
    nb = B // bt

    cost = pl.CostEstimate(
        flops=2 * B * K * N2 + 2 * B * N2 * out_w,
        transcendentals=0,
        bytes_accessed=int(w1.size * w1.dtype.itemsize
                           + nb * w2.size * 4 + nb * b1.size * 4
                           + n_tiles * flat.size * flat.dtype.itemsize
                           + n_tiles * B * out_w * 4),
    )

    partial = pl.pallas_call(
        _fused_head_kernel,
        out_shape=jax.ShapeDtypeStruct((n_tiles, B, out_w), jnp.float32),
        grid_spec=pltpu.PrefetchScalarGridSpec(
            num_scalar_prefetch=0,
            grid=(n_tiles, nb),      # weight tiles outer (streamed once), batch inner
            in_specs=[
                pl.BlockSpec((bt, K), lambda n, b: (b, 0)),        # activations
                pl.BlockSpec((K, tn), lambda n, b: (0, n)),        # bf16 fused layer 1
                pl.BlockSpec((1, tn), lambda n, b: (0, n)),        # fused layer-1 bias
                pl.BlockSpec((tn, out_w), lambda n, b: (n, 0)),    # block-diag layer 2
            ],
            out_specs=pl.BlockSpec((1, bt, out_w), lambda n, b: (n, b, 0)),
        ),
        compiler_params=pltpu.CompilerParams(
            dimension_semantics=("parallel", "parallel")),
        cost_estimate=cost,
    )(flat, w1, b1, w2)

    # Tiny finalize in plain JAX (no dedicated kernel for a [B, action_dim] array).
    y = jnp.sum(partial, axis=0) + b2                          # [B, A+1]
    a, v = y[:, :-1], y[:, -1:]
    return a - jnp.mean(a, axis=-1, keepdims=True) + v


# -----------------------------------------------------------------------------
# HPT forward
# -----------------------------------------------------------------------------
def hpt_forward(x, params):
    B = x.shape[0]
    x3 = x.reshape(B, -1, FEATURE_DIM)
    stem = policy_stem(x3, params)                   # [B*16, 128] bf16
    flat = stem.reshape(B, HIDDEN)                   # [B, 2048]  bf16
    q = dueling_head(flat, params)                   # [B, action_dim]
    return {"logit": q}


# -----------------------------------------------------------------------------
# Deterministic parameter init (torch-Linear-style uniform bounds; tokens ~ N*0.02)
# -----------------------------------------------------------------------------
def init_params(key, action_dim):
    def lin(k, fan_in, fan_out):
        k1, k2 = jax.random.split(k)
        bound = 1.0 / (fan_in ** 0.5)
        w = jax.random.uniform(k1, (fan_in, fan_out), jnp.float32, -bound, bound)
        b = jax.random.uniform(k2, (fan_out,), jnp.float32, -bound, bound)
        return w, b

    keys = jax.random.split(key, 9)
    p = {}
    w_fe, b_fe = lin(keys[0], FEATURE_DIM, TOKEN_DIM)
    p["w_fe"], p["b_fe"] = w_fe, b_fe.reshape(1, TOKEN_DIM)
    p["tokens"] = jax.random.normal(keys[1], (TOKEN_NUM, TOKEN_DIM), jnp.float32) * 0.02
    p["w_q"], _ = lin(keys[2], TOKEN_DIM, INNER)          # to_q has no bias
    p["w_kv"], _ = lin(keys[3], TOKEN_DIM, 2 * INNER)     # to_kv has no bias
    w_out, b_out = lin(keys[4], INNER, TOKEN_DIM)
    p["w_out"], p["b_out"] = w_out, b_out.reshape(1, TOKEN_DIM)

    # --- fused stem params consumed by the Pallas kernel (computed once) ------
    # kv = (x @ w_fe + b_fe) @ w_kv == x @ (w_fe @ w_kv) + (b_fe @ w_kv)
    p["w_kv_f"] = w_fe @ p["w_kv"]                        # [8, 1024]
    p["b_kv_f"] = p["b_fe"] @ p["w_kv"]                   # [1, 1024]
    # Block-diagonal pre-scaled Q: sim[:, h*16+i] = k[:, h*64:(h+1)*64] . q_h[i]
    q_scaled = (p["tokens"] @ p["w_q"]) * (DIM_HEAD ** -0.5)   # [16, 512]
    qblk = jnp.zeros((INNER, ATTN_COLS), jnp.float32)
    for h in range(HEADS):
        qblk = qblk.at[h * DIM_HEAD:(h + 1) * DIM_HEAD,
                       h * TOKEN_NUM:(h + 1) * TOKEN_NUM].set(
            q_scaled[:, h * DIM_HEAD:(h + 1) * DIM_HEAD].T)
    p["q_blk"] = qblk

    # --- Dueling head ---------------------------------------------------------
    # The two 2048x2048 first-layer weights are stored in bf16 (the MLP is
    # HBM-bandwidth bound on weight reads); accumulation stays f32.
    w_a1, b_a1 = lin(keys[5], HIDDEN, HIDDEN)
    w_a2, b_a2 = lin(keys[6], HIDDEN, action_dim)
    w_v1, b_v1 = lin(keys[7], HIDDEN, HIDDEN)
    w_v2, b_v2 = lin(keys[8], HIDDEN, 1)
    w_a1 = w_a1.astype(jnp.bfloat16)
    w_v1 = w_v1.astype(jnp.bfloat16)
    # Per-branch copies (used by the pure-JAX reference).
    p["w_a1"], p["b_a1"] = w_a1, b_a1
    p["w_a2"], p["b_a2"] = w_a2, b_a2
    p["w_v1"], p["b_v1"] = w_v1, b_v1
    p["w_v2"], p["b_v2"] = w_v2, b_v2
    # Fused forms consumed by the Pallas head kernel:
    #   w1: [2048, 4096]  (advantage | value first layers, bf16)
    #   w2: [4096, A+1]   block-diagonal second layer so that
    #       relu(flat @ w1 + b1) @ w2 == [a | v] in one streaming pass.
    p["w1"] = jnp.concatenate([w_a1, w_v1], axis=1)
    p["b1"] = jnp.concatenate([b_a1, b_v1]).reshape(1, 2 * HIDDEN)
    w2 = jnp.zeros((2 * HIDDEN, action_dim + 1), jnp.float32)
    w2 = w2.at[:HIDDEN, :action_dim].set(w_a2)
    w2 = w2.at[HIDDEN:, action_dim:].set(w_v2)
    p["w2"] = w2
    p["b2"] = jnp.concatenate([b_a2, b_v2]).reshape(1, action_dim + 1)
    return p


# -----------------------------------------------------------------------------
# Pure-JAX reference (for correctness check)
# -----------------------------------------------------------------------------
def hpt_reference(x, params):
    B = x.shape[0]
    feat = x.reshape(B, -1, FEATURE_DIM) @ params["w_fe"] + params["b_fe"]
    tokens = jnp.broadcast_to(params["tokens"], (B, TOKEN_NUM, TOKEN_DIM))
    q = tokens @ params["w_q"]
    kv = feat @ params["w_kv"]
    k, v = kv[..., :INNER], kv[..., INNER:]

    def split_heads(t):
        b, n, _ = t.shape
        return t.reshape(b, n, HEADS, DIM_HEAD).transpose(0, 2, 1, 3)

    qh, kh, vh = map(split_heads, (q, k, v))
    sim = jnp.einsum("bhid,bhjd->bhij", qh, kh) * (DIM_HEAD ** -0.5)
    attn = jax.nn.softmax(sim, axis=-1)
    out = jnp.einsum("bhij,bhjd->bhid", attn, vh)
    out = out.transpose(0, 2, 1, 3).reshape(B, TOKEN_NUM, INNER)
    stem = out @ params["w_out"] + params["b_out"]
    flat = stem.reshape(B, -1)
    # Mirror the kernel's bf16 first-layer numerics (bf16 weights are exact here).
    flat16 = flat.astype(jnp.bfloat16)
    ha = jnp.maximum(jnp.dot(flat16, params["w_a1"],
                             preferred_element_type=jnp.float32) + params["b_a1"], 0.0)
    hv = jnp.maximum(jnp.dot(flat16, params["w_v1"],
                             preferred_element_type=jnp.float32) + params["b_v1"], 0.0)
    a = ha @ params["w_a2"] + params["b_a2"]
    vv = hv @ params["w_v2"] + params["b_v2"]
    return a - a.mean(axis=-1, keepdims=True) + vv


if __name__ == "__main__":
    key = jax.random.PRNGKey(0)
    kx, kp = jax.random.split(key)

    B, T, F = 2, 8, FEATURE_DIM       # x: [B, T, F]  (reshaped to [B, N, F] inside)
    action_dim = 6

    x = jax.random.normal(kx, (B, T, F), jnp.float32)
    params = init_params(kp, action_dim)

    out = hpt_forward(x, params)
    q = jax.block_until_ready(out["logit"])

    ref = hpt_reference(x, params)
    assert q.shape == (B, action_dim)
    assert bool(jnp.allclose(q, ref, atol=2e-2, rtol=2e-2)), (q, ref)

    print("KERNEL_OK")
</pallas_src>

<mosaic_0001>
module attributes {stable_mosaic.version = 11 : i64} {
  func.func @_stem_attn_kernel(%arg0: i32, %arg1: memref<16x8xf32, #tpu.memory_space<vmem>>, %arg2: memref<8x1024xf32, #tpu.memory_space<vmem>>, %arg3: memref<1x1024xf32, #tpu.memory_space<vmem>>, %arg4: memref<512x128xf32, #tpu.memory_space<vmem>>, %arg5: memref<512x128xf32, #tpu.memory_space<vmem>>, %arg6: memref<1x128xf32, #tpu.memory_space<vmem>>, %arg7: memref<32x128xbf16, #tpu.memory_space<vmem>>) attributes {dimension_semantics = [#tpu.dimension_semantics<parallel>], iteration_bounds = array<i64: 1>, scalar_prefetch = 0 : i64, scratch_operands = 0 : i64, tpu.core_type = #tpu.core_type<tc>, window_params = [{transform_indices = @transform_0, window_bounds = array<i64: 16, 8>}, {pipeline_mode = #tpu.pipeline_mode<synchronous>, transform_indices = @transform_1, window_bounds = array<i64: 8, 1024>}, {pipeline_mode = #tpu.pipeline_mode<synchronous>, transform_indices = @transform_2, window_bounds = array<i64: 1, 1024>}, {pipeline_mode = #tpu.pipeline_mode<synchronous>, transform_indices = @transform_3, window_bounds = array<i64: 512, 128>}, {pipeline_mode = #tpu.pipeline_mode<synchronous>, transform_indices = @transform_4, window_bounds = array<i64: 512, 128>}, {pipeline_mode = #tpu.pipeline_mode<synchronous>, transform_indices = @transform_5, window_bounds = array<i64: 1, 128>}, {transform_indices = @transform_6, window_bounds = array<i64: 32, 128>}]} {
    %c0 = arith.constant 0 : index
    %c0_0 = arith.constant 0 : index
    %0 = vector.load %arg1[%c0, %c0_0] : memref<16x8xf32, #tpu.memory_space<vmem>>, vector<16x8xf32>
    %c0_1 = arith.constant 0 : index
    %c0_2 = arith.constant 0 : index
    %1 = vector.load %arg2[%c0_1, %c0_2] : memref<8x1024xf32, #tpu.memory_space<vmem>>, vector<8x1024xf32>
    %cst = arith.constant dense<0.000000e+00> : vector<16x1024xf32>
    %2 = tpu.matmul %0, %1, %cst {dimension_numbers = #tpu.dot_dimension_numbers<[1], [0], [0], [1], [0, 0, 1, 1], [], []>} : vector<16x8xf32>, vector<8x1024xf32>, vector<16x1024xf32> -> vector<16x1024xf32>
    %c0_3 = arith.constant 0 : index
    %c0_4 = arith.constant 0 : index
    %3 = vector.load %arg3[%c0_3, %c0_4] : memref<1x1024xf32, #tpu.memory_space<vmem>>, vector<1x1024xf32>
    %4 = vector.broadcast %3 : vector<1x1024xf32> to vector<16x1024xf32>
    %5 = arith.addf %2, %4 : vector<16x1024xf32>
    %6 = vector.extract_strided_slice %5 {offsets = [0, 0], sizes = [16, 512], strides = [1, 1]} : vector<16x1024xf32> to vector<16x512xf32>
    %c0_5 = arith.constant 0 : index
    %c0_6 = arith.constant 0 : index
    %7 = vector.load %arg4[%c0_5, %c0_6] : memref<512x128xf32, #tpu.memory_space<vmem>>, vector<512x128xf32>
    %cst_7 = arith.constant dense<0.000000e+00> : vector<16x128xf32>
    %8 = tpu.matmul %6, %7, %cst_7 {dimension_numbers = #tpu.dot_dimension_numbers<[1], [0], [0], [1], [0, 0, 1, 1], [], []>} : vector<16x512xf32>, vector<512x128xf32>, vector<16x128xf32> -> vector<16x128xf32>
    %9 = vector.shape_cast %8 : vector<16x128xf32> to vector<2x8x128xf32>
    %cst_8 = arith.constant dense<0xFF800000> : vector<2x128xf32>
    %10 = vector.multi_reduction <maximumf>, %9, %cst_8 [1] : vector<2x8x128xf32> to vector<2x128xf32>
    %11 = vector.shape_cast %10 : vector<2x128xf32> to vector<2x1x128xf32>
    %12 = vector.broadcast %11 : vector<2x1x128xf32> to vector<2x8x128xf32>
    %13 = arith.subf %9, %12 : vector<2x8x128xf32>
    %14 = math.exp %13 : vector<2x8x128xf32>
    %cst_9 = arith.constant dense<0.000000e+00> : vector<2x128xf32>
    %15 = vector.multi_reduction <add>, %14, %cst_9 [1] : vector<2x8x128xf32> to vector<2x128xf32>
    %16 = vector.shape_cast %15 : vector<2x128xf32> to vector<2x1x128xf32>
    %17 = tpu.reciprocal %16 {approx = true} : vector<2x1x128xf32> -> vector<2x1x128xf32>
    %18 = vector.broadcast %17 : vector<2x1x128xf32> to vector<2x8x128xf32>
    %19 = arith.mulf %14, %18 : vector<2x8x128xf32>
    %20 = tpu.transpose %19, [0, 2, 1] : vector<2x8x128xf32> -> vector<2x128x8xf32>
    %21 = vector.extract_strided_slice %5 {offsets = [0, 512], sizes = [16, 512], strides = [1, 1]} : vector<16x1024xf32> to vector<16x512xf32>
    %22 = vector.shape_cast %21 : vector<16x512xf32> to vector<2x8x512xf32>
    %23 = vector.extract_strided_slice %20 {offsets = [0, 0, 0], sizes = [2, 16, 8], strides = [1, 1, 1]} : vector<2x128x8xf32> to vector<2x16x8xf32>
    %24 = vector.extract_strided_slice %22 {offsets = [0, 0, 0], sizes = [2, 8, 64], strides = [1, 1, 1]} : vector<2x8x512xf32> to vector<2x8x64xf32>
    "tpu.trace_start"() <{level = 10 : i32, message = "bij,bjd->bid"}> : () -> ()
    %cst_10 = arith.constant dense<0.000000e+00> : vector<2x16x64xf32>
    %25 = tpu.matmul %23, %24, %cst_10 {dimension_numbers = #tpu.dot_dimension_numbers<[2], [1], [1], [2], [0, 0, 0, 1, 1, 2], [0], [0]>} : vector<2x16x8xf32>, vector<2x8x64xf32>, vector<2x16x64xf32> -> vector<2x16x64xf32>
    "tpu.trace_stop"() : () -> ()
    %26 = vector.extract_strided_slice %20 {offsets = [0, 16, 0], sizes = [2, 16, 8], strides = [1, 1, 1]} : vector<2x128x8xf32> to vector<2x16x8xf32>
    %27 = vector.extract_strided_slice %22 {offsets = [0, 0, 64], sizes = [2, 8, 64], strides = [1, 1, 1]} : vector<2x8x512xf32> to vector<2x8x64xf32>
    "tpu.trace_start"() <{level = 10 : i32, message = "bij,bjd->bid"}> : () -> ()
    %cst_11 = arith.constant dense<0.000000e+00> : vector<2x16x64xf32>
    %28 = tpu.matmul %26, %27, %cst_11 {dimension_numbers = #tpu.dot_dimension_numbers<[2], [1], [1], [2], [0, 0, 0, 1, 1, 2], [0], [0]>} : vector<2x16x8xf32>, vector<2x8x64xf32>, vector<2x16x64xf32> -> vector<2x16x64xf32>
    "tpu.trace_stop"() : () -> ()
    %29 = vector.extract_strided_slice %20 {offsets = [0, 32, 0], sizes = [2, 16, 8], strides = [1, 1, 1]} : vector<2x128x8xf32> to vector<2x16x8xf32>
    %30 = vector.extract_strided_slice %22 {offsets = [0, 0, 128], sizes = [2, 8, 64], strides = [1, 1, 1]} : vector<2x8x512xf32> to vector<2x8x64xf32>
    "tpu.trace_start"() <{level = 10 : i32, message = "bij,bjd->bid"}> : () -> ()
    %cst_12 = arith.constant dense<0.000000e+00> : vector<2x16x64xf32>
    %31 = tpu.matmul %29, %30, %cst_12 {dimension_numbers = #tpu.dot_dimension_numbers<[2], [1], [1], [2], [0, 0, 0, 1, 1, 2], [0], [0]>} : vector<2x16x8xf32>, vector<2x8x64xf32>, vector<2x16x64xf32> -> vector<2x16x64xf32>
    "tpu.trace_stop"() : () -> ()
    %32 = vector.extract_strided_slice %20 {offsets = [0, 48, 0], sizes = [2, 16, 8], strides = [1, 1, 1]} : vector<2x128x8xf32> to vector<2x16x8xf32>
    %33 = vector.extract_strided_slice %22 {offsets = [0, 0, 192], sizes = [2, 8, 64], strides = [1, 1, 1]} : vector<2x8x512xf32> to vector<2x8x64xf32>
    "tpu.trace_start"() <{level = 10 : i32, message = "bij,bjd->bid"}> : () -> ()
    %cst_13 = arith.constant dense<0.000000e+00> : vector<2x16x64xf32>
    %34 = tpu.matmul %32, %33, %cst_13 {dimension_numbers = #tpu.dot_dimension_numbers<[2], [1], [1], [2], [0, 0, 0, 1, 1, 2], [0], [0]>} : vector<2x16x8xf32>, vector<2x8x64xf32>, vector<2x16x64xf32> -> vector<2x16x64xf32>
    "tpu.trace_stop"() : () -> ()
    %35 = vector.extract_strided_slice %20 {offsets = [0, 64, 0], sizes = [2, 16, 8], strides = [1, 1, 1]} : vector<2x128x8xf32> to vector<2x16x8xf32>
    %36 = vector.extract_strided_slice %22 {offsets = [0, 0, 256], sizes = [2, 8, 64], strides = [1, 1, 1]} : vector<2x8x512xf32> to vector<2x8x64xf32>
    "tpu.trace_start"() <{level = 10 : i32, message = "bij,bjd->bid"}> : () -> ()
    %cst_14 = arith.constant dense<0.000000e+00> : vector<2x16x64xf32>
    %37 = tpu.matmul %35, %36, %cst_14 {dimension_numbers = #tpu.dot_dimension_numbers<[2], [1], [1], [2], [0, 0, 0, 1, 1, 2], [0], [0]>} : vector<2x16x8xf32>, vector<2x8x64xf32>, vector<2x16x64xf32> -> vector<2x16x64xf32>
    "tpu.trace_stop"() : () -> ()
    %38 = vector.extract_strided_slice %20 {offsets = [0, 80, 0], sizes = [2, 16, 8], strides = [1, 1, 1]} : vector<2x128x8xf32> to vector<2x16x8xf32>
    %39 = vector.extract_strided_slice %22 {offsets = [0, 0, 320], sizes = [2, 8, 64], strides = [1, 1, 1]} : vector<2x8x512xf32> to vector<2x8x64xf32>
    "tpu.trace_start"() <{level = 10 : i32, message = "bij,bjd->bid"}> : () -> ()
    %cst_15 = arith.constant dense<0.000000e+00> : vector<2x16x64xf32>
    %40 = tpu.matmul %38, %39, %cst_15 {dimension_numbers = #tpu.dot_dimension_numbers<[2], [1], [1], [2], [0, 0, 0, 1, 1, 2], [0], [0]>} : vector<2x16x8xf32>, vector<2x8x64xf32>, vector<2x16x64xf32> -> vector<2x16x64xf32>
    "tpu.trace_stop"() : () -> ()
    %41 = vector.extract_strided_slice %20 {offsets = [0, 96, 0], sizes = [2, 16, 8], strides = [1, 1, 1]} : vector<2x128x8xf32> to vector<2x16x8xf32>
    %42 = vector.extract_strided_slice %22 {offsets = [0, 0, 384], sizes = [2, 8, 64], strides = [1, 1, 1]} : vector<2x8x512xf32> to vector<2x8x64xf32>
    "tpu.trace_start"() <{level = 10 : i32, message = "bij,bjd->bid"}> : () -> ()
    %cst_16 = arith.constant dense<0.000000e+00> : vector<2x16x64xf32>
    %43 = tpu.matmul %41, %42, %cst_16 {dimension_numbers = #tpu.dot_dimension_numbers<[2], [1], [1], [2], [0, 0, 0, 1, 1, 2], [0], [0]>} : vector<2x16x8xf32>, vector<2x8x64xf32>, vector<2x16x64xf32> -> vector<2x16x64xf32>
    "tpu.trace_stop"() : () -> ()
    %44 = vector.extract_strided_slice %20 {offsets = [0, 112, 0], sizes = [2, 16, 8], strides = [1, 1, 1]} : vector<2x128x8xf32> to vector<2x16x8xf32>
    %45 = vector.extract_strided_slice %22 {offsets = [0, 0, 448], sizes = [2, 8, 64], strides = [1, 1, 1]} : vector<2x8x512xf32> to vector<2x8x64xf32>
    "tpu.trace_start"() <{level = 10 : i32, message = "bij,bjd->bid"}> : () -> ()
    %cst_17 = arith.constant dense<0.000000e+00> : vector<2x16x64xf32>
    %46 = tpu.matmul %44, %45, %cst_17 {dimension_numbers = #tpu.dot_dimension_numbers<[2], [1], [1], [2], [0, 0, 0, 1, 1, 2], [0], [0]>} : vector<2x16x8xf32>, vector<2x8x64xf32>, vector<2x16x64xf32> -> vector<2x16x64xf32>
    "tpu.trace_stop"() : () -> ()
    %47 = tpu.concatenate %25, %28, %31, %34, %37, %40, %43, %46 in 2 : vector<2x16x64xf32>, vector<2x16x64xf32>, vector<2x16x64xf32>, vector<2x16x64xf32>, vector<2x16x64xf32>, vector<2x16x64xf32>, vector<2x16x64xf32>, vector<2x16x64xf32> -> vector<2x16x512xf32>
    %48 = vector.shape_cast %47 : vector<2x16x512xf32> to vector<32x512xf32>
    %c0_18 = arith.constant 0 : index
    %c0_19 = arith.constant 0 : index
    %49 = vector.load %arg5[%c0_18, %c0_19] : memref<512x128xf32, #tpu.memory_space<vmem>>, vector<512x128xf32>
    %cst_20 = arith.constant dense<0.000000e+00> : vector<32x128xf32>
    %50 = tpu.matmul %48, %49, %cst_20 {dimension_numbers = #tpu.dot_dimension_numbers<[1], [0], [0], [1], [0, 0, 1, 1], [], []>} : vector<32x512xf32>, vector<512x128xf32>, vector<32x128xf32> -> vector<32x128xf32>
    %c0_21 = arith.constant 0 : index
    %c0_22 = arith.constant 0 : index
    %51 = vector.load %arg6[%c0_21, %c0_22] : memref<1x128xf32, #tpu.memory_space<vmem>>, vector<1x128xf32>
    %52 = vector.broadcast %51 : vector<1x128xf32> to vector<32x128xf32>
    %53 = arith.addf %50, %52 : vector<32x128xf32>
    %54 = arith.truncf %53 : vector<32x128xf32> to vector<32x128xbf16>
    %c0_23 = arith.constant 0 : index
    %c0_24 = arith.constant 0 : index
    %55 = vector.load %arg7[%c0_23, %c0_24] : memref<32x128xbf16, #tpu.memory_space<vmem>>, vector<32x128xbf16>
    tpu.vector_store %arg7[%c0_23, %c0_24], %54 {strides = array<i32>} : memref<32x128xbf16, #tpu.memory_space<vmem>>, vector<32x128xbf16>,
    return
  }
  func.func @transform_0(%arg0: i32) -> (i32, i32) {
    %c0_i32 = arith.constant 0 : i32
    %c0_i32_0 = arith.constant 0 : i32
    return %arg0, %c0_i32 : i32, i32
  }
  func.func @transform_1(%arg0: i32) -> (i32, i32) {
    %c0_i32 = arith.constant 0 : i32
    %c0_i32_0 = arith.constant 0 : i32
    %c0_i32_1 = arith.constant 0 : i32
    return %c0_i32, %c0_i32_0 : i32, i32
  }
  func.func @transform_2(%arg0: i32) -> (i32, i32) {
    %c0_i32 = arith.constant 0 : i32
    %c0_i32_0 = arith.constant 0 : i32
    %c0_i32_1 = arith.constant 0 : i32
    return %c0_i32, %c0_i32_0 : i32, i32
  }
  func.func @transform_3(%arg0: i32) -> (i32, i32) {
    %c0_i32 = arith.constant 0 : i32
    %c0_i32_0 = arith.constant 0 : i32
    %c0_i32_1 = arith.constant 0 : i32
    return %c0_i32, %c0_i32_0 : i32, i32
  }
  func.func @transform_4(%arg0: i32) -> (i32, i32) {
    %c0_i32 = arith.constant 0 : i32
    %c0_i32_0 = arith.constant 0 : i32
    %c0_i32_1 = arith.constant 0 : i32
    return %c0_i32, %c0_i32_0 : i32, i32
  }
  func.func @transform_5(%arg0: i32) -> (i32, i32) {
    %c0_i32 = arith.constant 0 : i32
    %c0_i32_0 = arith.constant 0 : i32
    %c0_i32_1 = arith.constant 0 : i32
    return %c0_i32, %c0_i32_0 : i32, i32
  }
  func.func @transform_6(%arg0: i32) -> (i32, i32) {
    %c0_i32 = arith.constant 0 : i32
    %c0_i32_0 = arith.constant 0 : i32
    return %arg0, %c0_i32 : i32, i32
  }
}

</mosaic_0001>

<bundles_post_ra>
// kernel: tpu_custom_call.1
= control target key start
LH: loop header
LB: loop body
LE: loop exit
PB: predicated region body
PF: predicated region fallthrough
CT: control target
= control target key end

     0   :  { %11 = vsyncpa [#allocation3], 0  ;;  %s3170_s0 = inlined_call_operand.vmem [shape: f32[16,8], index: 0, kind: input, shape index: {}]   ;;  %s3171_s1 = inlined_call_operand.hbm [shape: f32[8,1024], index: 1, kind: input, shape index: {}]   ;;  %s3172_s2 = inlined_call_operand.vmem [shape: f32[1,1024], index: 2, kind: input, shape index: {}]   ;;  %s3173_s3 = inlined_call_operand.hbm [shape: f32[512,128], index: 3, kind: input, shape index: {}]   ;;  %s3174_s4 = inlined_call_operand.hbm [shape: f32[512,128], index: 4, kind: input, shape index: {}]   ;;  %s3175_s5 = inlined_call_operand.vmem [shape: f32[1,128], index: 5, kind: input, shape index: {}]   ;;  %s3176_s6 = inlined_call_operand.hbm [shape: bf16[32,128], index: 6, kind: output, shape index: {}]  }
   0x1   :  { %12 = vsyncpa [#allocation6], 0 }
   0x2   :  { %13 = vsyncpa [#allocation4], 0  ;;  %s2925_s21 = smov [#allocation5]  }
   0x3   :  { %s33_s22 = sshll.u32 %s2925_s21, 4  ;;  %s34_s22 = int_to_ptr.vmem [resolvable:$true] %s33_s22 }
   0x4   :  { %s2847_s23 = scalar_lea.vmem %s34_s22, 8192  ;;  %p2852_p1 = scmp.lt.s32.totalorder %s34_s22, %s34_s22 }
   0x5   :  { %p2848_p0 = scmp.ne.s32.totalorder %s34_s22, %s2847_s23  ;;  %p2853_p2 = scmp.lt.s32.totalorder %s2847_s23, %s2847_s23 }
   0x7   :  { %p2854_p3 = por %p2853_p2, %p2852_p1 }
   0x9   :  { %p2855_p4 = pnand %p2854_p3, %p2848_p0 }
   0xb   :  { %2858 = shalt.err (!%p2855_p4)
}
   0xc   :  { %s2926_s24 = smov 128   ;;  %s2927_s25 = smov 8  }
   0xd   :  { %39 = dma.hbm_to_vmem [thread:$0]  %s3173_s3, 8192, %s34_s22, [#allocation6], %s2926_s24, %s2926_s24, %s2927_s25  }
   0xe   :  { %s2928_s28 = smov [#allocation2]   ;;  %s2929_s30 = smov [#allocation7]  }
   0xf   :  { %s22_s29 = sshll.u32 %s2928_s28, 4  ;;  %s45_s7 = sshll.u32 %s2929_s30, 4  ;;  %s23_s29 = int_to_ptr.vmem [resolvable:$true] %s22_s29  ;;  %s46_s7 = int_to_ptr.vmem [resolvable:$true] %s45_s7 }
  0x10   :  { %s2867_s8 = scalar_lea.vmem %s23_s29, 1024  ;;  %p2872_p6 = scmp.lt.s32.totalorder %s23_s29, %s23_s29 }
  0x11   :  { %p2868_p5 = scmp.ne.s32.totalorder %s23_s29, %s2867_s8  ;;  %p2873_p7 = scmp.lt.s32.totalorder %s2867_s8, %s2867_s8 }
  0x13   :  { %p2874_p8 = por %p2873_p7, %p2872_p6 }
  0x15   :  { %p2875_p9 = pnand %p2874_p8, %p2868_p5 }
  0x17   :  { %2878 = shalt.err (!%p2875_p9)
}
  0x18   :  { %25 = dma.hbm_to_vmem [thread:$0]  %s3171_s1, 1024, %s23_s29, [#allocation3]  }
  0x19   :  { %s2887_s11 = scalar_lea.vmem %s46_s7, 8192  ;;  %p2892_p11 = scmp.lt.s32.totalorder %s46_s7, %s46_s7 }
  0x1a   :  { %p2888_p10 = scmp.ne.s32.totalorder %s46_s7, %s2887_s11  ;;  %p2893_p12 = scmp.lt.s32.totalorder %s2887_s11, %s2887_s11 }
  0x1c   :  { %p2894_p13 = por %p2893_p12, %p2892_p11 }
  0x1e   :  { %p2895_p0 = pnand %p2894_p13, %p2888_p10 }
  0x20   :  { %2898 = shalt.err (!%p2895_p0)
}
  0x21   :  { %51 = dma.hbm_to_vmem [thread:$0]  %s3174_s4, 8192, %s46_s7, [#allocation6], %s2926_s24, %s2926_s24, %s2927_s25  }
  0x22   :  { %2919 = dma.done.wait [#allocation3], 1024  }
  0x23   :  { %2920 = vsyncadd [#allocation3], 4294966272 }
  0x24   :  { %2921 = dma.done.wait [#allocation6], 16384  }
  0x25   :  { %2922 = vsyncadd [#allocation6], 4294950912  ;;  %v2930_v0 = vmov 0.0   ;;  %v66_v1 = vld [vmem:[#allocation2 + $0x8] sm:$0xff]  ;;  %v68_v2 = vld [vmem:[#allocation2 + $0x18] sm:$0xff]  ;;  %vm115_vm0 = vcmask 64512  }
  0x26   :  { %186 = vmatprep.mubr.f32.mxu0 %v2930_v0  ;;  %263 = vmatprep.mubr.f32.mxu1 %v2930_v0  ;;  %v65_v3 = vld [vmem:[#allocation2] sm:$0xff]  ;;  %v67_v4 = vld [vmem:[#allocation2 + $0x10] sm:$0xff]  ;;  %v70_v6 = vld [vmem:[#allocation2 + $0x28] sm:$0xff]  ;;  %vm2134_vm1 = vcmask 523264  }
  0x27   :  { %152 = vmatprep.subr.mxu0 %v66_v1  ;;  %229 = vmatprep.subr.mxu1 %v68_v2  ;;  %v63_v5 = vld [vmem:[%s3170_s0] sm:$0xff]  ;;  %v72_v7 = vld [vmem:[#allocation2 + $0x38] sm:$0xff]  ;;  %v71_v9 = vld [vmem:[#allocation2 + $0x30] sm:$0xff] }
  0x28   :  { %153 = vmatpush1.msra.mxu0 %v65_v3  ;;  %230 = vmatpush1.msra.mxu1 %v67_v4  ;;  %v69_v8 = vld [vmem:[#allocation2 + $0x20] sm:$0xff]  ;;  %v2990_v10 = vld [vmem:[%s3170_s0 + $0x8] sm:$0xff]  ;;  %v461_v11 = vld [vmem:[#allocation5 + $0xf8] sm:$0xff] }
  0x29   :  { %2430 = vmatmul.mubr.msk.f32.vlgmr.msra.gmra.mxu0 %vm115_vm0, %v63_v5  ;;  %2432 = vmatmul.mubr.msk.f32.vlgmr.msra.gmra.mxu1 %vm115_vm0, %v63_v5  ;;  %v493_v12 = vld [vmem:[#allocation5 + $0x1f8] sm:$0xff]  ;;  %v460_v15 = vld [vmem:[#allocation5 + $0xf0] sm:$0xff]  ;;  %v459_v19 = vld [vmem:[#allocation5 + $0xe8] sm:$0xff] }
  0x2a   :  { %192 = vmatprep.mubr.f32.mxu0 %v2930_v0  ;;  %269 = vmatprep.mubr.f32.mxu1 %v2930_v0  ;;  %v445_v13 = vld [vmem:[#allocation5 + $0x78] sm:$0xff]  ;;  %v492_v16 = vld [vmem:[#allocation5 + $0x1f0] sm:$0xff]  ;;  %v491_v20 = vld [vmem:[#allocation5 + $0x1e8] sm:$0xff] }
  0x2b   :  { %306 = vmatprep.subr.mxu0 %v70_v6  ;;  %383 = vmatprep.subr.mxu1 %v72_v7  ;;  %v477_v14 = vld [vmem:[#allocation5 + $0x178] sm:$0xff]  ;;  %v444_v17 = vld [vmem:[#allocation5 + $0x70] sm:$0xff]  ;;  %v443_v21 = vld [vmem:[#allocation5 + $0x68] sm:$0xff] }
  0x2c   :  { %307 = vmatpush1.msra.mxu0 %v69_v8  ;;  %384 = vmatpush1.msra.mxu1 %v71_v9  ;;  %v476_v18 = vld [vmem:[#allocation5 + $0x170] sm:$0xff]  ;;  %v475_v22 = vld [vmem:[#allocation5 + $0x168] sm:$0xff]  ;;  %v458_v23 = vld [vmem:[#allocation5 + $0xe0] sm:$0xff] }
  0x2d   :  { %2431 = vmatmul.mubr.msk.f32.gmra.mxu0 %vm115_vm0, %v2990_v10  ;;  %2433 = vmatmul.mubr.msk.f32.gmra.mxu1 %vm115_vm0, %v2990_v10  ;;  %v490_v24 = vld [vmem:[#allocation5 + $0x1e0] sm:$0xff]  ;;  %v457_v27 = vld [vmem:[#allocation5 + $0xd8] sm:$0xff]  ;;  %v456_v31 = vld [vmem:[#allocation5 + $0xd0] sm:$0xff] }
  0x2e   :  { %340 = vmatprep.mubr.f32.mxu0 %v2930_v0  ;;  %417 = vmatprep.mubr.f32.mxu1 %v2930_v0  ;;  %v442_v25 = vld [vmem:[#allocation5 + $0x60] sm:$0xff]  ;;  %v489_v28 = vld [vmem:[#allocation5 + $0x1d8] sm:$0xff]  ;;  %v488_v32 = vld [vmem:[#allocation5 + $0x1d0] sm:$0xff] }
  0x2f   :  { %2490 = vmatprep.subr.mxu0 %v461_v11  ;;  %2528 = vmatprep.subr.mxu1 %v493_v12  ;;  %v474_v26 = vld [vmem:[#allocation5 + $0x160] sm:$0xff]  ;;  %v441_v29 = vld [vmem:[#allocation5 + $0x58] sm:$0xff]  ;;  %v440_v33 = vld [vmem:[#allocation5 + $0x50] sm:$0xff]  ;;  %v75_v11 = vlaneseq }
  0x30   :  { %v473_v30 = vld [vmem:[#allocation5 + $0x158] sm:$0xff]  ;;  %v472_v34 = vld [vmem:[#allocation5 + $0x150] sm:$0xff]  ;;  %v455_v35 = vld [vmem:[#allocation5 + $0xc8] sm:$0xff] }
  0x31   :  { %2434 = vmatmul.mubr.msk.f32.vlgmr.msra.gmra.mxu0 %vm115_vm0, %v63_v5  ;;  %2436 = vmatmul.mubr.msk.f32.vlgmr.msra.gmra.mxu1 %vm115_vm0, %v63_v5  ;;  %v487_v36 = vld [vmem:[#allocation5 + $0x1c8] sm:$0xff]  ;;  %v454_v39 = vld [vmem:[#allocation5 + $0xc0] sm:$0xff]  ;;  %v453_v43 = vld [vmem:[#allocation5 + $0xb8] sm:$0xff]  ;;  %v76_v12 = vshrl.u32 %v75_v11, 7 }
  0x32   :  { %2491 = vmatpush3.msra.mxu0 %v445_v13  ;;  %2529 = vmatpush3.msra.mxu1 %v477_v14  ;;  %v439_v37 = vld [vmem:[#allocation5 + $0x48] sm:$0xff]  ;;  %v486_v40 = vld [vmem:[#allocation5 + $0x1c0] sm:$0xff]  ;;  %v485_v44 = vld [vmem:[#allocation5 + $0x1b8] sm:$0xff] }
  0x33   :  { %2492 = vmatprep.subr.mxu0 %v460_v15  ;;  %2530 = vmatprep.subr.mxu1 %v492_v16  ;;  %v471_v38 = vld [vmem:[#allocation5 + $0x148] sm:$0xff]  ;;  %v438_v41 = vld [vmem:[#allocation5 + $0x40] sm:$0xff]  ;;  %v437_v45 = vld [vmem:[#allocation5 + $0x38] sm:$0xff]  ;;  %v81_v13 = vsub.s32 1, %v76_v12  ;;  %v89_v14 = vsub.s32 3, %v76_v12  ;;  %v77_v15 = vsub.s32 0, %v76_v12 }
  0x34   :  { %2493 = vmatpush3.msra.mxu0 %v444_v17  ;;  %2531 = vmatpush3.msra.mxu1 %v476_v18  ;;  %v470_v42 = vld [vmem:[#allocation5 + $0x140] sm:$0xff]  ;;  %v469_v46 = vld [vmem:[#allocation5 + $0x138] sm:$0xff]  ;;  %v452_v47 = vld [vmem:[#allocation5 + $0xb0] sm:$0xff]  ;;  %v85_v16 = vsub.s32 2, %v76_v12 }
  0x35   :  { %2494 = vmatprep.subr.mxu0 %v459_v19  ;;  %2532 = vmatprep.subr.mxu1 %v491_v20  ;;  %v484_v48 = vld [vmem:[#allocation5 + $0x1b0] sm:$0xff]  ;;  %v451_v51 = vld [vmem:[#allocation5 + $0xa8] sm:$0xff]  ;;  %v450_v55 = vld [vmem:[#allocation5 + $0xa0] sm:$0xff] }
  0x36   :  { %2495 = vmatpush3.msra.mxu0 %v443_v21  ;;  %2533 = vmatpush3.msra.mxu1 %v475_v22  ;;  %v436_v49 = vld [vmem:[#allocation5 + $0x30] sm:$0xff]  ;;  %v483_v52 = vld [vmem:[#allocation5 + $0x1a8] sm:$0xff]  ;;  %v482_v56 = vld [vmem:[#allocation5 + $0x1a0] sm:$0xff] }
  0x37   :  { %2496 = vmatprep.subr.mxu0 %v458_v23  ;;  %2534 = vmatprep.subr.mxu1 %v490_v24  ;;  %v468_v50 = vld [vmem:[#allocation5 + $0x130] sm:$0xff]  ;;  %v435_v53 = vld [vmem:[#allocation5 + $0x28] sm:$0xff]  ;;  %v434_v57 = vld [vmem:[#allocation5 + $0x20] sm:$0xff]  ;;  %v93_v24 = vsub.s32 4, %v76_v12 }
  0x38   :  { %2497 = vmatpush3.msra.mxu0 %v442_v25  ;;  %2535 = vmatpush3.msra.mxu1 %v474_v26  ;;  %v467_v54 = vld [vmem:[#allocation5 + $0x128] sm:$0xff]  ;;  %v466_v58 = vld [vmem:[#allocation5 + $0x120] sm:$0xff]  ;;  %v449_v59 = vld [vmem:[#allocation5 + $0x98] sm:$0xff] }
  0x39   :  { %2498 = vmatprep.subr.mxu0 %v457_v27  ;;  %2536 = vmatprep.subr.mxu1 %v489_v28  ;;  %v481_v60 = vld [vmem:[#allocation5 + $0x198] sm:$0xff]  ;;  %v448_v63 = vld [vmem:[#allocation5 + $0x90] sm:$0xff]  ;;  %v447_v4 = vld [vmem:[#allocation5 + $0x88] sm:$0xff]  ;;  %v101_v27 = vsub.s32 6, %v76_v12 }
  0x3a   :  { %2499 = vmatpush3.msra.mxu0 %v441_v29  ;;  %2537 = vmatpush3.msra.mxu1 %v473_v30  ;;  %v433_v61 = vld [vmem:[#allocation5 + $0x18] sm:$0xff]  ;;  %v480_v1 = vld [vmem:[#allocation5 + $0x190] sm:$0xff]  ;;  %v479_v5 = vld [vmem:[#allocation5 + $0x188] sm:$0xff]  ;;  %v97_v30 = vsub.s32 5, %v76_v12 }
  0x3b   :  { %2500 = vmatprep.subr.mxu0 %v456_v31  ;;  %2538 = vmatprep.subr.mxu1 %v488_v32  ;;  %v465_v62 = vld [vmem:[#allocation5 + $0x118] sm:$0xff]  ;;  %v432_v2 = vld [vmem:[#allocation5 + $0x10] sm:$0xff]  ;;  %v431_v6 = vld [vmem:[#allocation5 + $0x8] sm:$0xff] }
  0x3c   :  { %2501 = vmatpush3.msra.mxu0 %v440_v33  ;;  %2539 = vmatpush3.msra.mxu1 %v472_v34  ;;  %v464_v3 = vld [vmem:[#allocation5 + $0x110] sm:$0xff]  ;;  %v463_v7 = vld [vmem:[#allocation5 + $0x108] sm:$0xff]  ;;  %v478_v8 = vld [vmem:[#allocation5 + $0x180] sm:$0xff] }
  0x3d   :  { %2502 = vmatprep.subr.mxu0 %v455_v35  ;;  %2540 = vmatprep.subr.mxu1 %v487_v36  ;;  %v430_v9 = vld [vmem:[#allocation5] sm:$0xff] }
  0x3e   :  { %2503 = vmatpush3.msra.mxu0 %v439_v37  ;;  %2541 = vmatpush3.msra.mxu1 %v471_v38  ;;  %v73_v17 = vld [vmem:[%s3172_s2] sm:$0xff]  ;;  %s2931_s2 = smov 64  }
  0x3f   :  { %2504 = vmatprep.subr.mxu0 %v454_v39  ;;  %2542 = vmatprep.subr.mxu1 %v486_v40  ;;  %v82_v18 = vrot.slane %v73_v17, %v81_v13  ;;  %v90_v19 = vrot.slane %v73_v17, %v89_v14  ;;  %v78_v20 = vrot.slane %v73_v17, %v77_v15 }
  0x40   :  { %2505 = vmatpush3.msra.mxu0 %v438_v41  ;;  %2543 = vmatpush3.msra.mxu1 %v470_v42  ;;  %v86_v22 = vrot.slane %v73_v17, %v85_v16  ;;  %v94_v35 = vrot.slane %v73_v17, %v93_v24  ;;  %v102_v40 = vrot.slane %v73_v17, %v101_v27 }
  0x41   :  { %2506 = vmatprep.subr.mxu0 %v453_v43  ;;  %2544 = vmatprep.subr.mxu1 %v485_v44  ;;  %v98_v43 = vrot.slane %v73_v17, %v97_v30  ;;  %v105_v44 = vsub.s32 7, %v76_v12 }
  0x42   :  { %2507 = vmatpush3.msra.mxu0 %v437_v45  ;;  %2545 = vmatpush3.msra.mxu1 %v469_v46 }
  0x43   :  { %2508 = vmatprep.subr.mxu0 %v452_v47  ;;  %2546 = vmatprep.subr.mxu1 %v484_v48 }
  0x44   :  { %2509 = vmatpush3.msra.mxu0 %v436_v49  ;;  %2547 = vmatpush3.msra.mxu1 %v468_v50 }
  0x45   :  { %2510 = vmatprep.subr.mxu0 %v451_v51  ;;  %2548 = vmatprep.subr.mxu1 %v483_v52  ;;  %v3014_v51 = vrot.slane %v73_v17, %v105_v44 }
  0x46   :  { %2511 = vmatpush3.msra.mxu0 %v435_v53  ;;  %2549 = vmatpush3.msra.mxu1 %v467_v54 }
  0x47   :  { %2512 = vmatprep.subr.mxu0 %v450_v55  ;;  %2550 = vmatprep.subr.mxu1 %v482_v56 }
  0x48   :  { %346 = vmatprep.mubr.f32.mxu0 %v2930_v0  ;;  %2513 = vmatpush3.msra.mxu0 %v434_v57 }
  0x49   :  { %2551 = vmatpush3.msra.mxu1 %v466_v58  ;;  %2435 = vmatmul.mubr.msk.f32.gmra.mxu0 %vm115_vm0, %v2990_v10 }
  0x4a   :  { %2514 = vmatprep.subr.mxu0 %v449_v59  ;;  %2552 = vmatprep.subr.mxu1 %v481_v60 }
  0x4b   :  { %423 = vmatprep.mubr.f32.mxu1 %v2930_v0  ;;  %2515 = vmatpush3.msra.mxu0 %v433_v61  ;;  %v446_v0 = vld [vmem:[#allocation5 + $0x80] sm:$0xff] }
  0x4c   :  { %2553 = vmatpush3.msra.mxu1 %v465_v62  ;;  %2516 = vmatprep.subr.mxu0 %v448_v63 }
  0x4d   :  { %2437 = vmatmul.mubr.msk.f32.gmra.mxu1 %vm115_vm0, %v2990_v10  ;;  %2554 = vmatprep.subr.mxu1 %v480_v1  ;;  %v462_v10 = vld [vmem:[#allocation5 + $0x100] sm:$0xff] }
  0x4e   :  { %2517 = vmatpush3.msra.mxu0 %v432_v2  ;;  %2555 = vmatpush3.msra.mxu1 %v464_v3 }
  0x4f   :  { %2518 = vmatprep.subr.mxu0 %v447_v4  ;;  %2556 = vmatprep.subr.mxu1 %v479_v5 }
  0x50   :  { %2519 = vmatpush3.msra.mxu0 %v431_v6  ;;  %2557 = vmatpush3.msra.mxu1 %v463_v7 }
  0x51   :  { %2520 = vmatprep.subr.mxu0 %v446_v0  ;;  %2558 = vmatprep.subr.mxu1 %v478_v8 }
  0x52   :  { %2521 = vmatpush3.msra.mxu0 %v430_v9  ;;  %2559 = vmatpush3.msra.mxu1 %v462_v10 }
  0xe9   :  { %v188_v21 = vpop.f32.mrf.mxu0  ;;  %v265_v23 = vpop.f32.mrf.mxu1 }
  0xea   :  { %v189_v31 = vadd.f32 %v188_v21, %v78_v20  ;;  %v266_v32 = vadd.f32 %v265_v23, %v86_v22 }
  0xeb   :  { %v190_v25 = vpop.f32.mrf.mxu0  ;;  %v267_v26 = vpop.f32.mrf.mxu1 }
  0xec   :  { %v191_v28 = vadd.f32 %v190_v25, %v82_v18  ;;  %v268_v29 = vadd.f32 %v267_v26, %v90_v19 }
  0xed   :  { %v194_v33 = vpop.f32.mrf.mxu0  ;;  %v271_v34 = vpop.f32.mrf.mxu1 }
  0xee   :  { %558 = vmatprep.mubr.f32.mxu0 %v191_v28  ;;  %633 = vmatprep.mubr.f32.mxu1 %v268_v29  ;;  %v195_v36 = vadd.f32 %v194_v33, %v78_v20  ;;  %v272_v37 = vadd.f32 %v271_v34, %v86_v22 }
  0xef   :  { %v196_v38 = vpop.f32.mrf.mxu0  ;;  %v273_v39 = vpop.f32.mrf.mxu1  ;;  %559 = vmatmul.mubr.f32.vlgmr.msra.gmra.mxu0 %v189_v31  ;;  %634 = vmatmul.mubr.f32.vlgmr.msra.gmra.mxu1 %v266_v32 }
  0xf0   :  { %v197_v41 = vadd.f32 %v196_v38, %v82_v18  ;;  %v274_v42 = vadd.f32 %v273_v39, %v90_v19 }
  0xf1   :  { %v342_v45 = vpop.f32.mrf.mxu0  ;;  %v419_v46 = vpop.f32.mrf.mxu1 }
  0xf2   :  { %563 = vmatprep.mubr.f32.mxu0 %v197_v41  ;;  %638 = vmatprep.mubr.f32.mxu1 %v274_v42  ;;  %v343_v47 = vadd.f32 %v342_v45, %v94_v35  ;;  %v3010_v49 = vadd.f32 %v419_v46, %v102_v40 }
  0xf3   :  { %564 = vmatmul.mubr.f32.gmra.mxu0 %v195_v36  ;;  %639 = vmatmul.mubr.f32.gmra.mxu1 %v272_v37  ;;  %v344_v48 = vpop.f32.mrf.mxu0  ;;  %v421_v52 = vpop.f32.mrf.mxu1 }
  0xf4   :  { %905 = vrot.lane.b32.xlu0 %v343_v47, %s2931_s2  ;;  %v3012_v50 = vadd.f32 %v344_v48, %v98_v43  ;;  %2702 = vmatprep.subr.mxu0 %v343_v47  ;;  %v3021_v53 = vadd.f32 %v421_v52, %v3014_v51 }
  0xf5   :  { %2703 = vmatpush3.msra.mxu0 %v343_v47 }
  0xf6   :  { %1237 = vrot.lane.b32.xlu1 %v3012_v50, %s2931_s2 }
  0xf8   :  { %1569 = vrot.lane.b32.xlu0 %v3010_v49, %s2931_s2 }
  0xfc   :  { %1901 = vrot.lane.b32.xlu0 %v3021_v53, %s2931_s2 }
 0x109   :  { %v348_v54 = vpop.f32.mrf.mxu0 }
 0x10a   :  { %v349_v55 = vadd.f32 %v348_v54, %v94_v35 }
 0x10b   :  { %v350_v56 = vpop.f32.mrf.mxu0 }
 0x10c   :  { %990 = vrot.lane.b32.xlu0 %v349_v55, %s2931_s2  ;;  %v3026_v57 = vadd.f32 %v350_v56, %v98_v43  ;;  %2707 = vmatprep.subr.mxu1 %v349_v55 }
 0x10d   :  { %v425_v58 = vpop.f32.mrf.mxu1  ;;  %2708 = vmatpush3.msra.mxu1 %v349_v55 }
 0x10e   :  { %v3028_v59 = vadd.f32 %v425_v58, %v102_v40  ;;  %1322 = vrot.lane.b32.xlu1 %v3026_v57, %s2931_s2 }
 0x10f   :  { %v427_v1 = vpop.f32.mrf.mxu1 }
 0x110   :  { %1654 = vrot.lane.b32.xlu0 %v3028_v59, %s2931_s2  ;;  %v3045_v52 = vadd.f32 %v427_v1, %v3014_v51 }
 0x166   :  { %v3034_v60 = vpop.permute.xlu0 %905 }
 0x167   :  { %2712 = vmatprep.subr.mxu0 %v3034_v60 }
 0x168   :  { %v1238_v54 = vpop.permute.xlu1 %1237 }
 0x16a   :  { %v3037_v61 = vpop.permute.xlu0 %1569 }
 0x16e   :  { %v3039_v62 = vpop.permute.xlu0 %1901 }
 0x17e   :  { %v3041_v63 = vpop.permute.xlu0 %990 }
 0x17f   :  { %2717 = vmatprep.subr.mxu1 %v3041_v63 }
 0x180   :  { %v1323_v55 = vpop.permute.xlu1 %1322 }
 0x182   :  { %v1655_v56 = vpop.permute.xlu0 %1654 }
 0x1af   :  { %v2522_v2 = vpop.f32.mrf.mxu0  ;;  %v2560_v3 = vpop.f32.mrf.mxu1 }
 0x1b1   :  { %v2523_v4 = vpop.f32.mrf.mxu0  ;;  %v2561_v5 = vpop.f32.mrf.mxu1 }
 0x1b2   :  { %v2524_v6 = vadd.f32 %v2523_v4, %v2522_v2  ;;  %v2562_v7 = vadd.f32 %v2561_v5, %v2560_v3 }
 0x1b3   :  { %v2525_v0 = vpop.f32.mrf.mxu0  ;;  %v2563_v8 = vpop.f32.mrf.mxu1 }
 0x1b4   :  { %v636_v9 = vadd.f32 %v2562_v7, %v2524_v6 }
 0x1b5   :  { %v2526_v10 = vpop.f32.mrf.mxu0  ;;  %v2564_v11 = vpop.f32.mrf.mxu1 }
 0x1b6   :  { %v644_v12 = vrot.slane %v636_v9, 4  ;;  %v2527_v13 = vadd.f32 %v2526_v10, %v2525_v0  ;;  %v2565_v14 = vadd.f32 %v2564_v11, %v2563_v8 }
 0x1b8   :  { %v645_v15 = vmax.f32 %v636_v9, %v644_v12  ;;  %v641_v16 = vadd.f32 %v2565_v14, %v2527_v13 }
 0x1ba   :  { %v646_v17 = vrot.slane %v645_v15, 2  ;;  %v650_v18 = vrot.slane %v641_v16, 4 }
 0x1bc   :  { %v647_v19 = vmax.f32 %v645_v15, %v646_v17  ;;  %v651_v20 = vmax.f32 %v641_v16, %v650_v18 }
 0x1be   :  { %v648_v21 = vrot.slane %v647_v19, 1  ;;  %v652_v22 = vrot.slane %v651_v20, 2 }
 0x1c0   :  { %v649_v23 = vmax.f32 %v647_v19, %v648_v21  ;;  %v653_v24 = vmax.f32 %v651_v20, %v652_v22 }
 0x1c2   :  { %v656_v25 = vsub.f32 %v636_v9, %v649_v23  ;;  %v654_v26 = vrot.slane %v653_v24, 1  ;;  %v2182_v23 = vld [vmem:[#allocation7 + $0xf8] sm:$0xff] }
 0x1c4   :  { %v658_v27 = vmul.f32 1.442695, %v656_v25  ;;  %v655_v28 = vmax.f32 %v653_v24, %v654_v26  ;;  %v2181_v24 = vld [vmem:[#allocation7 + $0xf0] sm:$0xff]  ;;  %v2180_v26 = vld [vmem:[#allocation7 + $0xe8] sm:$0xff] }
 0x1c5   :  { %v2165_v25 = vld [vmem:[#allocation7 + $0x70] sm:$0xff] }
 0x1c6   :  { %2831 = vpow2.f32 %v658_v27  ;;  %v657_v29 = vsub.f32 %v641_v16, %v655_v28  ;;  %v2164_v27 = vld [vmem:[#allocation7 + $0x68] sm:$0xff]  ;;  %v2179_v28 = vld [vmem:[#allocation7 + $0xe0] sm:$0xff] }
 0x1c8   :  { %v660_v30 = vmul.f32 1.442695, %v657_v29  ;;  %v2163_v29 = vld [vmem:[#allocation7 + $0x60] sm:$0xff] }
 0x1ca   :  { %2833 = vpow2.f32 %v660_v30  ;;  %v2178_v30 = vld [vmem:[#allocation7 + $0xd8] sm:$0xff] }
 0x1d3   :  { %v2832_v31 = vpop.eup %2831 }
 0x1d4   :  { %v662_v32 = vrot.slane %v2832_v31, 4 }
 0x1d6   :  { %v663_v33 = vadd.f32 %v2832_v31, %v662_v32  ;;  %v2177_v32 = vld [vmem:[#allocation7 + $0xd0] sm:$0xff] }
 0x1d7   :  { %v2834_v34 = vpop.eup %2833 }
 0x1d8   :  { %v664_v35 = vrot.slane %v663_v33, 2  ;;  %v668_v36 = vrot.slane %v2834_v34, 4 }
 0x1da   :  { %v665_v37 = vadd.f32 %v664_v35, %v663_v33  ;;  %v669_v38 = vadd.f32 %v2834_v34, %v668_v36  ;;  %v2161_v33 = vld [vmem:[#allocation7 + $0x50] sm:$0xff]  ;;  %v2160_v35 = vld [vmem:[#allocation7 + $0x48] sm:$0xff]  ;;  %v2175_v36 = vld [vmem:[#allocation7 + $0xc0] sm:$0xff] }
 0x1dc   :  { %v666_v39 = vrot.slane %v665_v37, 1  ;;  %v670_v40 = vrot.slane %v669_v38, 2 }
 0x1de   :  { %v667_v41 = vadd.f32 %v666_v39, %v665_v37  ;;  %v671_v42 = vadd.f32 %v670_v40, %v669_v38  ;;  %v2159_v37 = vld [vmem:[#allocation7 + $0x40] sm:$0xff]  ;;  %v2174_v38 = vld [vmem:[#allocation7 + $0xb8] sm:$0xff]  ;;  %v2173_v40 = vld [vmem:[#allocation7 + $0xb0] sm:$0xff] }
 0x1df   :  { %v2158_v39 = vld [vmem:[#allocation7 + $0x38] sm:$0xff] }
 0x1e0   :  { %2835 = vrcp.f32 %v667_v41  ;;  %v672_v43 = vrot.slane %v671_v42, 1  ;;  %v2157_v41 = vld [vmem:[#allocation7 + $0x30] sm:$0xff] }
 0x1e2   :  { %v673_v44 = vadd.f32 %v672_v43, %v671_v42  ;;  %v2172_v42 = vld [vmem:[#allocation7 + $0xa8] sm:$0xff] }
 0x1e3   :  { %v2156_v43 = vld [vmem:[#allocation7 + $0x28] sm:$0xff] }
 0x1e4   :  { %2837 = vrcp.f32 %v673_v44  ;;  %v2171_v44 = vld [vmem:[#allocation7 + $0xa0] sm:$0xff] }
 0x1ed   :  { %v2836_v45 = vpop.eup %2835 }
 0x1ee   :  { %v676_v46 = vmul.f32 %v2836_v45, %v2832_v31  ;;  %v2162_v31 = vld [vmem:[#allocation7 + $0x58] sm:$0xff]  ;;  %v2155_v45 = vld [vmem:[#allocation7 + $0x20] sm:$0xff] }
 0x1f0   :  { %678 = vxpose.xlu1.b32.start.end [1/1] (short) %v676_v46, 128  ;;  %v2170_v46 = vld [vmem:[#allocation7 + $0x98] sm:$0xff] }
 0x1f1   :  { %v2838_v47 = vpop.eup %2837 }
 0x1f2   :  { %v677_v48 = vmul.f32 %v2838_v47, %v2834_v34  ;;  %v2176_v34 = vld [vmem:[#allocation7 + $0xc8] sm:$0xff]  ;;  %v2154_v47 = vld [vmem:[#allocation7 + $0x18] sm:$0xff] }
 0x1f4   :  { %710 = vxpose.xlu0.b32.start.end [1/1] (short) %v677_v48, 128 }
 0x24a   :  { %1986 = vrot.lane.b32.xlu1 %v3045_v52, %s2931_s2 }
 0x26c   :  { %v694_v58 = vpop.trf.xlu1 }
 0x26d   :  { %2704 = vmatprep.mubr.msk.f32.mxu0 %vm115_vm0, %v694_v58 }
 0x270   :  { %v726_v2 = vpop.trf.xlu0  ;;  %v695_v3 = vpop.trf.xlu1 }
 0x271   :  { %2705 = vmatmul.mubr.msk.f32.vlgmr.msra.gmra.mxu0 %vm115_vm0, %v695_v3  ;;  %2709 = vmatprep.mubr.msk.f32.mxu1 %vm115_vm0, %v726_v2  ;;  %v2169_v3 = vld [vmem:[#allocation7 + $0x90] sm:$0xff] }
 0x272   :  { %2713 = vmatpush3.msra.mxu0 %v3034_v60 }
 0x273   :  { %2722 = vmatprep.subr.mxu0 %v3012_v50 }
 0x274   :  { %v727_v51 = vpop.trf.xlu0  ;;  %v696_v1 = vpop.trf.xlu1 }
 0x275   :  { %2710 = vmatmul.mubr.msk.f32.vlgmr.msra.gmra.mxu1 %vm115_vm0, %v727_v51  ;;  %2714 = vmatprep.mubr.msk.f32.mxu0 %vm115_vm0, %v696_v1  ;;  %v2153_v51 = vld [vmem:[#allocation7 + $0x10] sm:$0xff] }
 0x276   :  { %2718 = vmatpush3.msra.mxu1 %v3041_v63 }
 0x277   :  { %2727 = vmatprep.subr.mxu1 %v3026_v57 }
 0x278   :  { %v728_v4 = vpop.trf.xlu0  ;;  %v697_v5 = vpop.trf.xlu1 }
 0x279   :  { %2715 = vmatmul.mubr.msk.f32.vlgmr.msra.gmra.mxu0 %vm115_vm0, %v697_v5  ;;  %2719 = vmatprep.mubr.msk.f32.mxu1 %vm115_vm0, %v728_v4  ;;  %v2168_v5 = vld [vmem:[#allocation7 + $0x88] sm:$0xff] }
 0x27a   :  { %2723 = vmatpush3.msra.mxu0 %v3012_v50 }
 0x27b   :  { %2732 = vmatprep.subr.mxu0 %v1238_v54 }
 0x27c   :  { %v729_v60 = vpop.trf.xlu0  ;;  %v698_v6 = vpop.trf.xlu1 }
 0x27d   :  { %2720 = vmatmul.mubr.msk.f32.vlgmr.msra.gmra.mxu1 %vm115_vm0, %v729_v60  ;;  %2724 = vmatprep.mubr.msk.f32.mxu0 %vm115_vm0, %v698_v6  ;;  %v2152_v60 = vld [vmem:[#allocation7 + $0x8] sm:$0xff]  ;;  %v2167_v6 = vld [vmem:[#allocation7 + $0x80] sm:$0xff] }
 0x27e   :  { %2728 = vmatpush3.msra.mxu1 %v3026_v57 }
 0x27f   :  { %2737 = vmatprep.subr.mxu1 %v1323_v55 }
 0x280   :  { %v730_v63 = vpop.trf.xlu0  ;;  %v699_v7 = vpop.trf.xlu1 }
 0x281   :  { %2725 = vmatmul.mubr.msk.f32.vlgmr.msra.gmra.mxu0 %vm115_vm0, %v699_v7  ;;  %2729 = vmatprep.mubr.msk.f32.mxu1 %vm115_vm0, %v730_v63  ;;  %v2151_v63 = vld [vmem:[#allocation7] sm:$0xff] }
 0x282   :  { %2733 = vmatpush3.msra.mxu0 %v1238_v54 }
 0x283   :  { %2742 = vmatprep.subr.mxu0 %v3010_v49 }
 0x284   :  { %v731_v50 = vpop.trf.xlu0  ;;  %v700_v0 = vpop.trf.xlu1 }
 0x285   :  { %2730 = vmatmul.mubr.msk.f32.vlgmr.msra.gmra.mxu1 %vm115_vm0, %v731_v50  ;;  %2734 = vmatprep.mubr.msk.f32.mxu0 %vm115_vm0, %v700_v0  ;;  %v2214_v0 = vld [vmem:[#allocation7 + $0x1f8] sm:$0xff] }
 0x286   :  { %2738 = vmatpush3.msra.mxu1 %v1323_v55 }
 0x287   :  { %2747 = vmatprep.subr.mxu1 %v3028_v59 }
 0x288   :  { %v732_v57 = vpop.trf.xlu0  ;;  %v701_v8 = vpop.trf.xlu1 }
 0x289   :  { %2735 = vmatmul.mubr.msk.f32.vlgmr.msra.gmra.mxu0 %vm115_vm0, %v701_v8  ;;  %2739 = vmatprep.mubr.msk.f32.mxu1 %vm115_vm0, %v732_v57  ;;  %v2198_v57 = vld [vmem:[#allocation7 + $0x178] sm:$0xff]  ;;  %v2213_v8 = vld [vmem:[#allocation7 + $0x1f0] sm:$0xff] }
 0x28a   :  { %2743 = vmatpush3.msra.mxu0 %v3010_v49 }
 0x28b   :  { %2752 = vmatprep.subr.mxu0 %v3037_v61 }
 0x28c   :  { %v733_v9 = vpop.trf.xlu0  ;;  %v702_v10 = vpop.trf.xlu1 }
 0x28d   :  { %2740 = vmatmul.mubr.msk.f32.vlgmr.msra.gmra.mxu1 %vm115_vm0, %v733_v9  ;;  %2744 = vmatprep.mubr.msk.f32.mxu0 %vm115_vm0, %v702_v10  ;;  %v2197_v9 = vld [vmem:[#allocation7 + $0x170] sm:$0xff] }
 0x28e   :  { %2748 = vmatpush3.msra.mxu1 %v3028_v59 }
 0x28f   :  { %2757 = vmatprep.subr.mxu1 %v1655_v56 }
 0x290   :  { %v734_v11 = vpop.trf.xlu0  ;;  %v703_v12 = vpop.trf.xlu1 }
 0x291   :  { %2745 = vmatmul.mubr.msk.f32.vlgmr.msra.gmra.mxu0 %vm115_vm0, %v703_v12  ;;  %2749 = vmatprep.mubr.msk.f32.mxu1 %vm115_vm0, %v734_v11  ;;  %v2212_v12 = vld [vmem:[#allocation7 + $0x1e8] sm:$0xff] }
 0x292   :  { %2753 = vmatpush3.msra.mxu0 %v3037_v61 }
 0x293   :  { %2762 = vmatprep.subr.mxu0 %v3021_v53 }
 0x294   :  { %v735_v49 = vpop.trf.xlu0  ;;  %v704_v13 = vpop.trf.xlu1 }
 0x295   :  { %2750 = vmatmul.mubr.msk.f32.vlgmr.msra.gmra.mxu1 %vm115_vm0, %v735_v49  ;;  %2754 = vmatprep.mubr.msk.f32.mxu0 %vm115_vm0, %v704_v13  ;;  %v2196_v13 = vld [vmem:[#allocation7 + $0x168] sm:$0xff] }
 0x296   :  { %2758 = vmatpush3.msra.mxu1 %v1655_v56 }
 0x297   :  { %2767 = vmatprep.subr.mxu1 %v3045_v52 }
 0x298   :  { %v736_v59 = vpop.trf.xlu0  ;;  %v705_v14 = vpop.trf.xlu1 }
 0x299   :  { %2755 = vmatmul.mubr.msk.f32.vlgmr.msra.gmra.mxu0 %vm115_vm0, %v705_v14  ;;  %2759 = vmatprep.mubr.msk.f32.mxu1 %vm115_vm0, %v736_v59  ;;  %v2211_v59 = vld [vmem:[#allocation7 + $0x1e0] sm:$0xff] }
 0x29a   :  { %2763 = vmatpush3.msra.mxu0 %v3021_v53  ;;  %v2195_v14 = vld [vmem:[#allocation7 + $0x160] sm:$0xff] }
 0x29b   :  { %2772 = vmatprep.subr.mxu0 %v3039_v62 }
 0x29c   :  { %v737_v61 = vpop.trf.xlu0  ;;  %v706_v15 = vpop.trf.xlu1 }
 0x29d   :  { %2760 = vmatmul.mubr.msk.f32.vlgmr.msra.gmra.mxu1 %vm115_vm0, %v737_v61  ;;  %2764 = vmatprep.mubr.msk.f32.mxu0 %vm115_vm0, %v706_v15 }
 0x29e   :  { %2768 = vmatpush3.msra.mxu1 %v3045_v52 }
 0x2a0   :  { %v707_v16 = vpop.trf.xlu1  ;;  %v738_v17 = vpop.trf.xlu0 }
 0x2a1   :  { %2765 = vmatmul.mubr.msk.f32.vlgmr.msra.gmra.mxu0 %vm115_vm0, %v707_v16  ;;  %2769 = vmatprep.mubr.msk.f32.mxu1 %vm115_vm0, %v738_v17  ;;  %v2210_v17 = vld [vmem:[#allocation7 + $0x1d8] sm:$0xff] }
 0x2a2   :  { %2773 = vmatpush3.msra.mxu0 %v3039_v62  ;;  %v2166_v62 = vld [vmem:[#allocation7 + $0x78] sm:$0xff] }
 0x2a3   :  { %2614 = vmatprep.subr.mxu0 %v2182_v23  ;;  %v2208_v23 = vld [vmem:[#allocation7 + $0x1c8] sm:$0xff] }
 0x2a4   :  { %v708_v18 = vpop.trf.xlu1  ;;  %v739_v53 = vpop.trf.xlu0 }
 0x2a5   :  { %2774 = vmatprep.mubr.msk.f32.mxu0 %vm115_vm0, %v708_v18  ;;  %2770 = vmatmul.mubr.msk.f32.vlgmr.msra.gmra.mxu1 %vm115_vm0, %v739_v53  ;;  %v2194_v18 = vld [vmem:[#allocation7 + $0x158] sm:$0xff]  ;;  %v2209_v53 = vld [vmem:[#allocation7 + $0x1d0] sm:$0xff] }
 0x2a8   :  { %v709_v19 = vpop.trf.xlu1  ;;  %v740_v20 = vpop.trf.xlu0 }
 0x2a9   :  { %2775 = vmatmul.mubr.msk.f32.vlgmr.msra.gmra.mxu0 %vm115_vm0, %v709_v19  ;;  %2779 = vmatprep.mubr.msk.f32.mxu1 %vm115_vm0, %v740_v20  ;;  %v2193_v19 = vld [vmem:[#allocation7 + $0x150] sm:$0xff] }
 0x2aa   :  { %2615 = vmatpush3.msra.mxu0 %v2166_v62  ;;  %v2192_v62 = vld [vmem:[#allocation7 + $0x148] sm:$0xff] }
 0x2ab   :  { %2616 = vmatprep.subr.mxu0 %v2181_v24  ;;  %v2207_v24 = vld [vmem:[#allocation7 + $0x1c0] sm:$0xff] }
 0x2ac   :  { %v741_v22 = vpop.trf.xlu0  ;;  %2617 = vmatpush3.msra.mxu0 %v2165_v25  ;;  %v2191_v25 = vld [vmem:[#allocation7 + $0x140] sm:$0xff] }
 0x2ad   :  { %2618 = vmatprep.subr.mxu0 %v2180_v26  ;;  %v2206_v26 = vld [vmem:[#allocation7 + $0x1b8] sm:$0xff] }
 0x2ae   :  { %2619 = vmatpush3.msra.mxu0 %v2164_v27 }
 0x2af   :  { %2620 = vmatprep.subr.mxu0 %v2179_v28  ;;  %v2190_v28 = vld [vmem:[#allocation7 + $0x138] sm:$0xff] }
 0x2b0   :  { %2621 = vmatpush3.msra.mxu0 %v2163_v29 }
 0x2b1   :  { %2622 = vmatprep.subr.mxu0 %v2178_v30  ;;  %v2205_v30 = vld [vmem:[#allocation7 + $0x1b0] sm:$0xff] }
 0x2b2   :  { %2623 = vmatpush3.msra.mxu0 %v2162_v31  ;;  %v2189_v31 = vld [vmem:[#allocation7 + $0x130] sm:$0xff] }
 0x2b3   :  { %2624 = vmatprep.subr.mxu0 %v2177_v32  ;;  %v2204_v32 = vld [vmem:[#allocation7 + $0x1a8] sm:$0xff] }
 0x2b4   :  { %2625 = vmatpush3.msra.mxu0 %v2161_v33  ;;  %v2188_v33 = vld [vmem:[#allocation7 + $0x128] sm:$0xff] }
 0x2b5   :  { %2626 = vmatprep.subr.mxu0 %v2176_v34 }
 0x2b6   :  { %2627 = vmatpush3.msra.mxu0 %v2160_v35  ;;  %v2203_v35 = vld [vmem:[#allocation7 + $0x1a0] sm:$0xff] }
 0x2b7   :  { %2628 = vmatprep.subr.mxu0 %v2175_v36  ;;  %v2187_v36 = vld [vmem:[#allocation7 + $0x120] sm:$0xff] }
 0x2b8   :  { %2629 = vmatpush3.msra.mxu0 %v2159_v37  ;;  %v2202_v37 = vld [vmem:[#allocation7 + $0x198] sm:$0xff] }
 0x2b9   :  { %2630 = vmatprep.subr.mxu0 %v2174_v38  ;;  %v2186_v38 = vld [vmem:[#allocation7 + $0x118] sm:$0xff] }
 0x2ba   :  { %2631 = vmatpush3.msra.mxu0 %v2158_v39 }
 0x2bb   :  { %2632 = vmatprep.subr.mxu0 %v2173_v40  ;;  %v2201_v40 = vld [vmem:[#allocation7 + $0x190] sm:$0xff] }
 0x2bc   :  { %v1987_v21 = vpop.permute.xlu1 %1986  ;;  %2633 = vmatpush3.msra.mxu0 %v2157_v41  ;;  %v2185_v41 = vld [vmem:[#allocation7 + $0x110] sm:$0xff] }
 0x2bd   :  { %2777 = vmatprep.subr.mxu1 %v1987_v21  ;;  %2634 = vmatprep.subr.mxu0 %v2172_v42 }
 0x2be   :  { %2778 = vmatpush3.msra.mxu1 %v1987_v21  ;;  %2635 = vmatpush3.msra.mxu0 %v2156_v43  ;;  %v2200_v43 = vld [vmem:[#allocation7 + $0x188] sm:$0xff] }
 0x2bf   :  { %2780 = vmatmul.mubr.msk.f32.vlgmr.msra.gmra.mxu1 %vm115_vm0, %v741_v22  ;;  %2636 = vmatprep.subr.mxu0 %v2171_v44  ;;  %v2184_v44 = vld [vmem:[#allocation7 + $0x108] sm:$0xff] }
 0x2c0   :  { %2637 = vmatpush3.msra.mxu0 %v2155_v45  ;;  %2658 = vmatprep.subr.mxu1 %v2214_v0  ;;  %v2199_v45 = vld [vmem:[#allocation7 + $0x180] sm:$0xff] }
 0x2c1   :  { %2638 = vmatprep.subr.mxu0 %v2170_v46  ;;  %2659 = vmatpush3.msra.mxu1 %v2198_v57  ;;  %v2183_v46 = vld [vmem:[#allocation7 + $0x100] sm:$0xff] }
 0x2c2   :  { %2639 = vmatpush3.msra.mxu0 %v2154_v47  ;;  %2660 = vmatprep.subr.mxu1 %v2213_v8 }
 0x2c3   :  { %2640 = vmatprep.subr.mxu0 %v2169_v3  ;;  %2661 = vmatpush3.msra.mxu1 %v2197_v9 }
 0x2c4   :  { %2641 = vmatpush3.msra.mxu0 %v2153_v51  ;;  %2662 = vmatprep.subr.mxu1 %v2212_v12 }
 0x2c5   :  { %2642 = vmatprep.subr.mxu0 %v2168_v5  ;;  %2663 = vmatpush3.msra.mxu1 %v2196_v13 }
 0x2c6   :  { %2643 = vmatpush3.msra.mxu0 %v2152_v60  ;;  %2664 = vmatprep.subr.mxu1 %v2211_v59 }
 0x2c7   :  { %2644 = vmatprep.subr.mxu0 %v2167_v6  ;;  %2665 = vmatpush3.msra.mxu1 %v2195_v14 }
 0x2c8   :  { %2645 = vmatpush3.msra.mxu0 %v2151_v63  ;;  %2666 = vmatprep.subr.mxu1 %v2210_v17 }
 0x2c9   :  { %2667 = vmatpush3.msra.mxu1 %v2194_v18 }
 0x2ca   :  { %2668 = vmatprep.subr.mxu1 %v2209_v53 }
 0x2cb   :  { %2669 = vmatpush3.msra.mxu1 %v2193_v19 }
 0x2cc   :  { %2670 = vmatprep.subr.mxu1 %v2208_v23 }
 0x2cd   :  { %2671 = vmatpush3.msra.mxu1 %v2192_v62 }
 0x2ce   :  { %2672 = vmatprep.subr.mxu1 %v2207_v24 }
 0x2cf   :  { %2673 = vmatpush3.msra.mxu1 %v2191_v25 }
 0x2d0   :  { %2674 = vmatprep.subr.mxu1 %v2206_v26 }
 0x2d1   :  { %2675 = vmatpush3.msra.mxu1 %v2190_v28 }
 0x2d2   :  { %2676 = vmatprep.subr.mxu1 %v2205_v30 }
 0x2d3   :  { %2677 = vmatpush3.msra.mxu1 %v2189_v31 }
 0x2d4   :  { %2678 = vmatprep.subr.mxu1 %v2204_v32 }
 0x2d5   :  { %2679 = vmatpush3.msra.mxu1 %v2188_v33 }
 0x2d6   :  { %2680 = vmatprep.subr.mxu1 %v2203_v35 }
 0x2d7   :  { %2681 = vmatpush3.msra.mxu1 %v2187_v36 }
 0x2d8   :  { %2682 = vmatprep.subr.mxu1 %v2202_v37 }
 0x2d9   :  { %2683 = vmatpush3.msra.mxu1 %v2186_v38 }
 0x2da   :  { %2684 = vmatprep.subr.mxu1 %v2201_v40 }
 0x2db   :  { %2685 = vmatpush3.msra.mxu1 %v2185_v41 }
 0x2dc   :  { %2686 = vmatprep.subr.mxu1 %v2200_v43 }
 0x2dd   :  { %2687 = vmatpush3.msra.mxu1 %v2184_v44 }
 0x2de   :  { %2688 = vmatprep.subr.mxu1 %v2199_v45 }
 0x2df   :  { %2689 = vmatpush3.msra.mxu1 %v2183_v46  ;;  %v2470_v46 = vld [vmem:[%s3175_s5] ss:$0 sm:$0xff]  ;;  %s2932_s5 = smov [#allocation8]  }
 0x2e0   :  { %s2417_s18 = sshll.u32 %s2932_s5, 4  ;;  %s2418_s18 = int_to_ptr.vmem [resolvable:$true] %s2417_s18 }
 0x2e1   :  { %s2899_s19 = scalar_lea.vmem %s2418_s18, 256  ;;  %p2904_p2 = scmp.lt.s32.totalorder %s2418_s18, %s2418_s18 }
 0x2e2   :  { %p2900_p1 = scmp.ne.s32.totalorder %s2418_s18, %s2899_s19  ;;  %p2905_p3 = scmp.lt.s32.totalorder %s2899_s19, %s2899_s19 }
 0x2e4   :  { %p2906_p4 = por %p2905_p3, %p2904_p2 }
 0x2e6   :  { %p2907_p5 = pnand %p2906_p4, %p2900_p1 }
 0x331   :  { %v3099_v48 = vpop.f32.mrf.mxu0 }
 0x333   :  { %v3101_v52 = vpop.f32.mrf.mxu0 }
 0x335   :  { %v3103_v54 = vpop.f32.mrf.mxu1 }
 0x337   :  { %v3105_v56 = vpop.f32.mrf.mxu1 }
 0x339   :  { %v2716_v55 = vpop.f32.mrf.mxu0 }
 0x33b   :  { %v980_v58 = vpop.f32.mrf.mxu0 }
 0x33d   :  { %v3107_v2 = vpop.f32.mrf.mxu1 }
 0x33f   :  { %v1065_v4 = vpop.f32.mrf.mxu1 }
 0x341   :  { %v3109_v1 = vpop.f32.mrf.mxu0 }
 0x343   :  { %v3111_v7 = vpop.f32.mrf.mxu0 }
 0x345   :  { %v3113_v50 = vpop.f32.mrf.mxu1 }
 0x347   :  { %v3115_v11 = vpop.f32.mrf.mxu1 }
 0x349   :  { %v2736_v10 = vpop.f32.mrf.mxu0 }
 0x34a   :  { %v2796_v49 = vpack.i.bf16 %v2716_v55, %v2736_v10 }
 0x34b   :  { %v1312_v61 = vpop.f32.mrf.mxu0 }
 0x34c   :  { %v2791_v15 = vpack.i.bf16 %v980_v58, %v1312_v61  ;;  %2797 = vrot.lane.b32.xlu1 %v2796_v49, %s2931_s2 }
 0x34d   :  { %v2741_v16 = vpop.f32.mrf.mxu1 }
 0x34e   :  { %2792 = vrot.lane.b32.xlu0 %v2791_v15, %s2931_s2  ;;  %v2821_v27 = vpack.i.bf16 %v3107_v2, %v2741_v16 }
 0x34f   :  { %v1397_v20 = vpop.f32.mrf.mxu1 }
 0x350   :  { %v2811_v21 = vpack.i.bf16 %v1065_v4, %v1397_v20 }
 0x351   :  { %v3119_v22 = vpop.f32.mrf.mxu0 }
 0x352   :  { %2812 = vrot.lane.b32.xlu0 %v2811_v21, %s2931_s2 }
 0x353   :  { %v3123_v29 = vpop.f32.mrf.mxu0 }
 0x355   :  { %v3128_v3 = vpop.f32.mrf.mxu1 }
 0x356   :  { %2822 = vrot.lane.b32.xlu0 %v2821_v27, %s2931_s2 }
 0x357   :  { %v1559_v4 = vpop.f32.mrf.mxu1 }
 0x359   :  { %v2756_v34 = vpop.f32.mrf.mxu0 }
 0x35b   :  { %v1644_v39 = vpop.f32.mrf.mxu0 }
 0x35d   :  { %v2761_v5 = vpop.f32.mrf.mxu1 }
 0x35f   :  { %v1729_v60 = vpop.f32.mrf.mxu1 }
 0x361   :  { %v3126_v42 = vpop.f32.mrf.mxu0 }
 0x363   :  { %v1810_v47 = vpop.f32.mrf.mxu0 }
 0x365   :  { %v2771_v6 = vpop.f32.mrf.mxu1 }
 0x367   :  { %v1891_v63 = vpop.f32.mrf.mxu1 }
 0x369   :  { %v2776_v55 = vpop.f32.mrf.mxu0 }
 0x36a   :  { %v2806_v51 = vpack.i.bf16 %v2756_v34, %v2776_v55 }
 0x36b   :  { %v1976_v58 = vpop.f32.mrf.mxu0 }
 0x36c   :  { %v2801_v2 = vpack.i.bf16 %v1644_v39, %v1976_v58 }
 0x36e   :  { %2802 = vrot.lane.b32.xlu1 %v2801_v2, %s2931_s2 }
 0x372   :  { %2807 = vrot.lane.b32.xlu1 %v2806_v51, %s2931_s2 }
 0x37f   :  { %v2781_v0 = vpop.f32.mrf.mxu1 }
 0x380   :  { %v2826_v9 = vpack.i.bf16 %v2761_v5, %v2781_v0 }
 0x381   :  { %v2061_v57 = vpop.f32.mrf.mxu1 }
 0x382   :  { %v2816_v8 = vpack.i.bf16 %v1729_v60, %v2061_v57 }
 0x384   :  { %2817 = vrot.lane.b32.xlu1 %v2816_v8, %s2931_s2 }
 0x388   :  { %2827 = vrot.lane.b32.xlu1 %v2826_v9, %s2931_s2 }
 0x3be   :  { %v2798_v10 = vpop.permute.xlu1 %2797 }
 0x3bf   :  { %v2799_v49 = vunpack.i.l.bf16 %v2798_v10  ;;  %v2800_v15 = vunpack.i.h.bf16 %v2798_v10 }
 0x3c0   :  { %v2793_v12 = vpop.permute.xlu0 %2792 }
 0x3c1   :  { %v2795_v13 = vunpack.i.h.bf16 %v2793_v12  ;;  %v2794_v59 = vunpack.i.l.bf16 %v2793_v12  ;;  %v2140_v18 = vsel %vm2134_vm1, %v3109_v1, %v2799_v49  ;;  %v2136_v20 = vsel %vm2134_vm1, %v3099_v48, %v2800_v15 }
 0x3c3   :  { %v2139_v14 = vsel %vm2134_vm1, %v3111_v7, %v2794_v59  ;;  %v2135_v61 = vsel %vm2134_vm1, %v3101_v52, %v2795_v13 }
 0x3c4   :  { %v2813_v16 = vpop.permute.xlu0 %2812  ;;  %2286 = vmatprep.mubr.f32.mxu0 %v2139_v14 }
 0x3c5   :  { %v2814_v17 = vunpack.i.l.bf16 %v2813_v16  ;;  %2287 = vmatmul.mubr.f32.vlgmr.msra.gmra.mxu0 %v2135_v61  ;;  %v2815_v53 = vunpack.i.h.bf16 %v2813_v16 }
 0x3c6   :  { %2291 = vmatprep.mubr.f32.mxu0 %v2140_v18 }
 0x3c7   :  { %v2141_v7 = vsel %vm2134_vm1, %v3115_v11, %v2814_v17  ;;  %v2137_v23 = vsel %vm2134_vm1, %v3105_v56, %v2815_v53 }
 0x3c8   :  { %v2823_v19 = vpop.permute.xlu0 %2822 }
 0x3c9   :  { %v2824_v21 = vunpack.i.l.bf16 %v2823_v19  ;;  %2292 = vmatmul.mubr.f32.gmra.mxu0 %v2136_v20  ;;  %v2825_v52 = vunpack.i.h.bf16 %v2823_v19 }
 0x3ca   :  { %2296 = vmatprep.mubr.f32.mxu0 %v2141_v7 }
 0x3cb   :  { %v2142_v1 = vsel %vm2134_vm1, %v3113_v50, %v2824_v21  ;;  %v2138_v62 = vsel %vm2134_vm1, %v3103_v54, %v2825_v52 }
 0x3cd   :  { %2297 = vmatmul.mubr.f32.gmra.mxu0 %v2137_v23 }
 0x3ce   :  { %2301 = vmatprep.mubr.f32.mxu0 %v2142_v1 }
 0x3d1   :  { %2302 = vmatmul.mubr.f32.gmra.mxu0 %v2138_v62 }
 0x3e0   :  { %v2803_v48 = vpop.permute.xlu1 %2802 }
 0x3e1   :  { %v2805_v24 = vunpack.i.h.bf16 %v2803_v48  ;;  %v2804_v25 = vunpack.i.l.bf16 %v2803_v48 }
 0x3e3   :  { %v2147_v26 = vsel %vm2134_vm1, %v1810_v47, %v2804_v25  ;;  %v2143_v11 = vsel %vm2134_vm1, %v3123_v29, %v2805_v24 }
 0x3e4   :  { %v2808_v27 = vpop.permute.xlu1 %2807  ;;  %2371 = vmatprep.mubr.f32.mxu1 %v2147_v26 }
 0x3e5   :  { %v2810_v56 = vunpack.i.h.bf16 %v2808_v27  ;;  %v2809_v28 = vunpack.i.l.bf16 %v2808_v27  ;;  %2372 = vmatmul.mubr.f32.vlgmr.msra.gmra.mxu1 %v2143_v11 }
 0x3e7   :  { %v2148_v50 = vsel %vm2134_vm1, %v3126_v42, %v2809_v28  ;;  %v2144_v54 = vsel %vm2134_vm1, %v3119_v22, %v2810_v56 }
 0x3e8   :  { %2376 = vmatprep.mubr.f32.mxu1 %v2148_v50 }
 0x3e9   :  { %2377 = vmatmul.mubr.f32.gmra.mxu1 %v2144_v54 }
 0x3f6   :  { %v2818_v30 = vpop.permute.xlu1 %2817 }
 0x3f7   :  { %v2820_v31 = vunpack.i.h.bf16 %v2818_v30  ;;  %v2819_v32 = vunpack.i.l.bf16 %v2818_v30 }
 0x3f9   :  { %v2149_v33 = vsel %vm2134_vm1, %v1891_v63, %v2819_v32  ;;  %v2145_v29 = vsel %vm2134_vm1, %v1559_v4, %v2820_v31 }
 0x3fa   :  { %v2828_v34 = vpop.permute.xlu1 %2827  ;;  %2381 = vmatprep.mubr.f32.mxu1 %v2149_v33 }
 0x3fb   :  { %v2830_v35 = vunpack.i.h.bf16 %v2828_v34  ;;  %v2829_v36 = vunpack.i.l.bf16 %v2828_v34  ;;  %2382 = vmatmul.mubr.f32.gmra.mxu1 %v2145_v29 }
 0x3fd   :  { %v2150_v37 = vsel %vm2134_vm1, %v2771_v6, %v2829_v36  ;;  %v2146_v38 = vsel %vm2134_vm1, %v3128_v3, %v2830_v35 }
 0x3fe   :  { %2386 = vmatprep.mubr.f32.mxu1 %v2150_v37 }
 0x3ff   :  { %2387 = vmatmul.mubr.f32.gmra.mxu1 %v2146_v38 }
 0x485   :  { %v2646_v22 = vpop.f32.mrf.mxu0 }
 0x487   :  { %v2647_v39 = vpop.f32.mrf.mxu0 }
 0x488   :  { %v2648_v44 = vadd.f32 %v2647_v39, %v2646_v22 }
 0x489   :  { %v2649_v40 = vpop.f32.mrf.mxu0 }
 0x48a   :  { %v2289_v2 = vadd.f32 %v2648_v44, %v2470_v46 }
 0x48b   :  { %v2650_v41 = vpop.f32.mrf.mxu0 }
 0x48c   :  { %v2651_v45 = vadd.f32 %v2650_v41, %v2649_v40 }
 0x48d   :  { %v2652_v60 = vpop.f32.mrf.mxu0 }
 0x48e   :  { %v2294_v51 = vadd.f32 %v2651_v45, %v2470_v46 }
 0x48f   :  { %v2653_v63 = vpop.f32.mrf.mxu0 }
 0x490   :  { %v2654_v10 = vadd.f32 %v2653_v63, %v2652_v60 }
 0x491   :  { %v2655_v0 = vpop.f32.mrf.mxu0 }
 0x492   :  { %v2299_v14 = vadd.f32 %v2654_v10, %v2470_v46 }
 0x493   :  { %v2656_v57 = vpop.f32.mrf.mxu0 }
 0x494   :  { %v2657_v12 = vadd.f32 %v2656_v57, %v2655_v0 }
 0x496   :  { %v2304_v61 = vadd.f32 %v2657_v12, %v2470_v46 }
 0x4a5   :  { %v2690_v42 = vpop.f32.mrf.mxu1 }
 0x4a7   :  { %v2691_v43 = vpop.f32.mrf.mxu1 }
 0x4a8   :  { %v2692_v55 = vadd.f32 %v2691_v43, %v2690_v42 }
 0x4a9   :  { %v2693_v47 = vpop.f32.mrf.mxu1 }
 0x4aa   :  { %v2374_v4 = vadd.f32 %v2692_v55, %v2289_v2 }
 0x4ab   :  { %v2694_v58 = vpop.f32.mrf.mxu1 }
 0x4ac   :  { %v2695_v3 = vadd.f32 %v2694_v58, %v2693_v47 }
 0x4ae   :  { %v2379_v5 = vadd.f32 %v2695_v3, %v2294_v51 }
 0x4b0   :  { %v2482_v6 = vpack.c.bf16 %v2379_v5, %v2374_v4 }
 0x4b2   :  { %2483 = vst [vmem:[#allocation8] sm:$0xff] %v2482_v6  }
 0x4bb   :  { %v2696_v8 = vpop.f32.mrf.mxu1 }
 0x4bd   :  { %v2697_v9 = vpop.f32.mrf.mxu1 }
 0x4be   :  { %v2698_v13 = vadd.f32 %v2697_v9, %v2696_v8 }
 0x4bf   :  { %v2699_v49 = vpop.f32.mrf.mxu1 }
 0x4c0   :  { %v2384_v16 = vadd.f32 %v2698_v13, %v2299_v14 }
 0x4c1   :  { %v2700_v59 = vpop.f32.mrf.mxu1 }
 0x4c2   :  { %v2701_v15 = vadd.f32 %v2700_v59, %v2699_v49 }
 0x4c4   :  { %v2389_v17 = vadd.f32 %v2701_v15, %v2304_v61 }
 0x4c6   :  { %v2487_v18 = vpack.c.bf16 %v2389_v17, %v2384_v16 }
 0x4c8   :  { %2489 = vst [vmem:[#allocation8 + $0x8] sm:$0xff] %v2487_v18  }
 0x4c9   :  { %2910 = shalt.err (!%p2907_p5)
}
 0x4ca   :  { %s2933_s20 = smov 4  }
 0x4cb   :  { %2423 = dma.vmem_to_hbm [thread:$0]  %s2418_s18, 256, %s3176_s6, [#allocation4], %s2931_s2, %s2931_s2, %s2933_s20  }
 0x4cc   :  { %2923 = dma.done.wait [#allocation4], 256  }
 0x4cd   :  { %2924 = vsyncadd [#allocation4], 4294967040 }
 0x4ce   :  { %2427 = vsyncpa [#allocation3], 1 }
 0x4cf   :  { %2428 = vsyncpa [#allocation6], 1 }
 0x4d0   :  { %2429 = vsyncpa [#allocation4], 1 }

</bundles_post_ra>
